<compile_context>
chip_gen: v5e
topology: v5e:2x2
jax: 0.10.0
libtpu: 0.0.40
codegen_flags: <defaults>
</compile_context>

<pallas_src>
import jax
import jax.numpy as jnp
from jax.experimental import pallas as pl
from jax.experimental.pallas import tpu as pltpu


# ---------------------------------------------------------------------------
# Fused kernel: for one batch element, run the whole level chain.
#   refs = [x_0..x_{L-1},  w1t, b1, w2t, b2 (stacked [L,...]),
#           (wd_0, bdF_0), ..., (wd_{L-2}, bdF_{L-2}),
#           out_0..out_{L-1}]
# ---------------------------------------------------------------------------
def _make_fused_kernel(num_levels):
    L = num_levels
    n_in = L + 4 + 2 * (L - 1)

    def kernel(*refs):
        x_refs = refs[:L]
        w1t_ref, b1_ref, w2t_ref, b2_ref = refs[L:L + 4]
        dn_refs = refs[L + 4:n_in]
        out_refs = refs[n_in:n_in + L]

        prev = None                                   # bf16 carry, never hits HBM
        for i in range(L):
            x = x_refs[i][...].astype(jnp.bfloat16)   # (S_i, F)
            h = jnp.dot(x, w1t_ref[i],
                        preferred_element_type=jnp.float32) + b1_ref[i]
            h = jnp.maximum(h, 0.0)
            y = jnp.dot(h.astype(jnp.bfloat16), w2t_ref[i],
                        preferred_element_type=jnp.float32) + b2_ref[i]
            if i > 0:
                wd_ref = dn_refs[2 * (i - 1)]
                bd_ref = dn_refs[2 * (i - 1) + 1]
                y = y + jnp.dot(wd_ref[...], prev,
                                preferred_element_type=jnp.float32) + bd_ref[...]
            out_refs[i][...] = y.astype(out_refs[i].dtype)
            prev = y.astype(jnp.bfloat16)

    return kernel


def _vmem_limit_bytes(s_list, F):
    """Actual buffer bytes for the fused call (+ margin), not a blanket cap."""
    L = len(s_list)
    act = sum(S * F * 4 for S in s_list)                  # f32 input blocks (per batch)
    weights = L * F * F * 2 * 2 + L * 2 * F * 4           # bf16 mats + f32 biases
    down = sum(s_list[i + 1] * s_list[i] * 2 + s_list[i + 1] * F * 4
               for i in range(L - 1))
    need = 2 * 2 * act + 2 * (weights + down)             # in+out double-buffered
    return int(min(max(need + (4 << 20), 8 << 20), 32 << 20))


def fpn_up_fused(xs, mlp, downs):
    """xs: list of [B, S_i, F] f32; mlp: stacked weights; downs: [(wd_bf16, bdF_f32)]."""
    B, _, F = xs[0].shape
    L = len(xs)
    s_list = [x.shape[1] for x in xs]

    in_specs = [pl.BlockSpec((None, S, F), lambda b: (b, 0, 0)) for S in s_list]
    operands = list(xs)
    for name in ("w1t", "b1", "w2t", "b2"):               # all stacked, 3-D, resident
        in_specs.append(pl.BlockSpec(mlp[name].shape, lambda b: (0, 0, 0)))
        operands.append(mlp[name])
    for wd, bdf in downs:                                  # ragged shapes, resident
        in_specs.append(pl.BlockSpec(wd.shape, lambda b: (0, 0)))
        in_specs.append(pl.BlockSpec(bdf.shape, lambda b: (0, 0)))
        operands.extend([wd, bdf])

    out_shape = tuple(jax.ShapeDtypeStruct((B, S, F), xs[0].dtype) for S in s_list)
    out_specs = tuple(pl.BlockSpec((None, S, F), lambda b: (b, 0, 0)) for S in s_list)

    outs = pl.pallas_call(
        _make_fused_kernel(L),
        out_shape=out_shape,
        grid=(B,),
        in_specs=in_specs,
        out_specs=out_specs,
        compiler_params=pltpu.CompilerParams(
            dimension_semantics=("parallel",),
            vmem_limit_bytes=_vmem_limit_bytes(s_list, F)),
    )(*operands)
    return list(outs)


# ---------------------------------------------------------------------------
# FPN_UP module (parameters built deterministically in-script).
# ---------------------------------------------------------------------------
class FPN_UP:
    def __init__(self, input_shapes: dict, fpn_size: int, key):
        """input_shapes: {name: (B, S_i, fpn_size)}."""
        self.fpn_size = fpn_size
        self.names = list(input_shapes)
        self.params = {}
        F = fpn_size
        keys = jax.random.split(key, 6 * len(self.names))
        ki = 0
        for i, name in enumerate(self.names):
            w1 = 0.02 * jax.random.normal(keys[ki + 0], (F, F), jnp.float32)
            b1 = 0.02 * jax.random.normal(keys[ki + 1], (F,), jnp.float32)
            w2 = 0.02 * jax.random.normal(keys[ki + 2], (F, F), jnp.float32)
            b2 = 0.02 * jax.random.normal(keys[ki + 3], (F,), jnp.float32)
            # Pre-transpose / pre-cast once (hoisted out of every forward).
            self.params["Proj_" + name] = dict(
                w1t=w1.T.astype(jnp.bfloat16),
                w2t=w2.T.astype(jnp.bfloat16),
                b1=b1, b2=b2)
            if i != len(self.names) - 1:
                in_dim = input_shapes[name][1]
                out_dim = input_shapes[self.names[i + 1]][1]
                wd = 0.02 * jax.random.normal(keys[ki + 4], (out_dim, in_dim),
                                              jnp.float32)
                bd = 0.02 * jax.random.normal(keys[ki + 5], (out_dim,),
                                              jnp.float32)
                self.params["Down_" + name] = dict(
                    wb=wd.astype(jnp.bfloat16),
                    b=bd,
                    # lane-dense pre-broadcast bias (loaded once, resident)
                    bF=jnp.broadcast_to(bd[:, None], (out_dim, F)).astype(jnp.float32))
            ki += 6
        # Pre-stacked MLP weights for the kept (non-FPN1) levels.
        self.kept = [n for n in self.names if "FPN1_" not in n]
        self._stacked = self._stack(self.kept)

    def _stack(self, names):
        F = self.fpn_size
        return dict(
            w1t=jnp.stack([self.params["Proj_" + n]["w1t"] for n in names]),
            b1=jnp.stack([self.params["Proj_" + n]["b1"].reshape(1, F) for n in names]),
            w2t=jnp.stack([self.params["Proj_" + n]["w2t"] for n in names]),
            b2=jnp.stack([self.params["Proj_" + n]["b2"].reshape(1, F) for n in names]),
        )

    def __call__(self, x: dict) -> dict:
        x = dict(x)
        hs = [n for n in x if "FPN1_" not in n]
        if not hs:
            return x
        mlp = self._stacked if hs == self.kept else self._stack(hs)
        downs = [(self.params["Down_" + hs[i]]["wb"],
                  self.params["Down_" + hs[i]]["bF"]) for i in range(len(hs) - 1)]
        outs = fpn_up_fused([x[n] for n in hs], mlp, downs)
        for n, o in zip(hs, outs):
            x[n] = o
        return x


# ---------------------------------------------------------------------------
# Pure-JAX reference (same bf16-operand / f32-accumulate recipe as the kernel).
# ---------------------------------------------------------------------------
def _reference(model: FPN_UP, x: dict) -> dict:
    x = dict(x)
    hs = [n for n in x if "FPN1_" not in n]
    prev = None
    for i, name in enumerate(hs):
        p = model.params["Proj_" + name]
        xb = x[name].astype(jnp.bfloat16)
        h = jnp.dot(xb, p["w1t"],
                    preferred_element_type=jnp.float32) + p["b1"][None, None, :]
        h = jnp.maximum(h, 0.0)
        y = jnp.dot(h.astype(jnp.bfloat16), p["w2t"],
                    preferred_element_type=jnp.float32) + p["b2"][None, None, :]
        if i > 0:
            d = model.params["Down_" + hs[i - 1]]
            down = jnp.einsum("oi,bif->bof", d["wb"], prev,
                              preferred_element_type=jnp.float32)
            y = y + down + d["b"][None, :, None]
        x[name] = y.astype(x[name].dtype)
        prev = y.astype(jnp.bfloat16)
    return x


if __name__ == "__main__":
    key = jax.random.PRNGKey(0)
    B, F = 2, 128   # fpn_size = 128 -> lane-dense last dim on TPU
    # Small-scale analogue of the comment's pyramid (2304 -> 576 -> 144 -> 144).
    shapes = {
        "layer1": (B, 32, F),
        "layer2": (B, 16, F),
        "layer3": (B, 8, F),
        "layer4": (B, 8, F),
    }

    kin, kparam = jax.random.split(key)
    in_keys = jax.random.split(kin, len(shapes))
    x = {
        name: jax.random.normal(k, shp, jnp.float32)
        for k, (name, shp) in zip(in_keys, shapes.items())
    }

    model = FPN_UP(shapes, F, kparam)

    out = model(x)
    out = {k: jax.block_until_ready(v) for k, v in out.items()}

    ref = _reference(model, x)
    for name in out:
        assert out[name].shape == shapes[name]
        assert jnp.allclose(out[name], ref[name], atol=2e-3, rtol=2e-3), name

    print("KERNEL_OK")
</pallas_src>

<mosaic_0001>
module attributes {stable_mosaic.version = 11 : i64} {
  func.func @kernel(%arg0: i32, %arg1: memref<1x32x128xf32, #tpu.memory_space<vmem>>, %arg2: memref<1x16x128xf32, #tpu.memory_space<vmem>>, %arg3: memref<1x8x128xf32, #tpu.memory_space<vmem>>, %arg4: memref<1x8x128xf32, #tpu.memory_space<vmem>>, %arg5: memref<4x128x128xbf16, #tpu.memory_space<vmem>>, %arg6: memref<4x1x128xf32, #tpu.memory_space<vmem>>, %arg7: memref<4x128x128xbf16, #tpu.memory_space<vmem>>, %arg8: memref<4x1x128xf32, #tpu.memory_space<vmem>>, %arg9: memref<16x32xbf16, #tpu.memory_space<vmem>>, %arg10: memref<16x128xf32, #tpu.memory_space<vmem>>, %arg11: memref<8x16xbf16, #tpu.memory_space<vmem>>, %arg12: memref<8x128xf32, #tpu.memory_space<vmem>>, %arg13: memref<8x8xbf16, #tpu.memory_space<vmem>>, %arg14: memref<8x128xf32, #tpu.memory_space<vmem>>, %arg15: memref<1x32x128xf32, #tpu.memory_space<vmem>>, %arg16: memref<1x16x128xf32, #tpu.memory_space<vmem>>, %arg17: memref<1x8x128xf32, #tpu.memory_space<vmem>>, %arg18: memref<1x8x128xf32, #tpu.memory_space<vmem>>) attributes {dimension_semantics = [#tpu.dimension_semantics<parallel>], iteration_bounds = array<i64: 2>, scalar_prefetch = 0 : i64, scratch_operands = 0 : i64, tpu.core_type = #tpu.core_type<tc>, window_params = [{transform_indices = @transform_0, window_bounds = array<i64: 1, 32, 128>}, {transform_indices = @transform_1, window_bounds = array<i64: 1, 16, 128>}, {transform_indices = @transform_2, window_bounds = array<i64: 1, 8, 128>}, {transform_indices = @transform_3, window_bounds = array<i64: 1, 8, 128>}, {pipeline_mode = #tpu.pipeline_mode<synchronous>, transform_indices = @transform_4, window_bounds = array<i64: 4, 128, 128>}, {pipeline_mode = #tpu.pipeline_mode<synchronous>, transform_indices = @transform_5, window_bounds = array<i64: 4, 1, 128>}, {pipeline_mode = #tpu.pipeline_mode<synchronous>, transform_indices = @transform_6, window_bounds = array<i64: 4, 128, 128>}, {pipeline_mode = #tpu.pipeline_mode<synchronous>, transform_indices = @transform_7, window_bounds = array<i64: 4, 1, 128>}, {pipeline_mode = #tpu.pipeline_mode<synchronous>, transform_indices = @transform_8, window_bounds = array<i64: 16, 32>}, {pipeline_mode = #tpu.pipeline_mode<synchronous>, transform_indices = @transform_9, window_bounds = array<i64: 16, 128>}, {pipeline_mode = #tpu.pipeline_mode<synchronous>, transform_indices = @transform_10, window_bounds = array<i64: 8, 16>}, {pipeline_mode = #tpu.pipeline_mode<synchronous>, transform_indices = @transform_11, window_bounds = array<i64: 8, 128>}, {pipeline_mode = #tpu.pipeline_mode<synchronous>, transform_indices = @transform_12, window_bounds = array<i64: 8, 8>}, {pipeline_mode = #tpu.pipeline_mode<synchronous>, transform_indices = @transform_13, window_bounds = array<i64: 8, 128>}, {transform_indices = @transform_14, window_bounds = array<i64: 1, 32, 128>}, {transform_indices = @transform_15, window_bounds = array<i64: 1, 16, 128>}, {transform_indices = @transform_16, window_bounds = array<i64: 1, 8, 128>}, {transform_indices = @transform_17, window_bounds = array<i64: 1, 8, 128>}]} {
    %c0 = arith.constant 0 : index
    %c0_0 = arith.constant 0 : index
    %c0_1 = arith.constant 0 : index
    %0 = vector.load %arg1[%c0, %c0_0, %c0_1] : memref<1x32x128xf32, #tpu.memory_space<vmem>>, vector<1x32x128xf32>
    %1 = vector.shape_cast %0 : vector<1x32x128xf32> to vector<32x128xf32>
    %2 = arith.truncf %1 : vector<32x128xf32> to vector<32x128xbf16>
    %c0_2 = arith.constant 0 : index
    %c0_3 = arith.constant 0 : index
    %c0_4 = arith.constant 0 : index
    %3 = vector.load %arg5[%c0_2, %c0_3, %c0_4] : memref<4x128x128xbf16, #tpu.memory_space<vmem>>, vector<1x128x128xbf16>
    %4 = vector.shape_cast %3 : vector<1x128x128xbf16> to vector<128x128xbf16>
    %cst = arith.constant dense<0.000000e+00> : vector<32x128xf32>
    %5 = tpu.matmul %2, %4, %cst {dimension_numbers = #tpu.dot_dimension_numbers<[1], [0], [0], [1], [0, 0, 1, 1], [], []>} : vector<32x128xbf16>, vector<128x128xbf16>, vector<32x128xf32> -> vector<32x128xf32>
    %c0_5 = arith.constant 0 : index
    %c0_6 = arith.constant 0 : index
    %c0_7 = arith.constant 0 : index
    %6 = vector.load %arg6[%c0_5, %c0_6, %c0_7] : memref<4x1x128xf32, #tpu.memory_space<vmem>>, vector<1x1x128xf32>
    %7 = vector.shape_cast %6 : vector<1x1x128xf32> to vector<1x128xf32>
    %8 = vector.broadcast %7 : vector<1x128xf32> to vector<32x128xf32>
    %9 = arith.addf %5, %8 : vector<32x128xf32>
    %cst_8 = arith.constant 0.000000e+00 : f32
    %10 = vector.broadcast %cst_8 : f32 to vector<32x128xf32>
    %11 = arith.maximumf %9, %10 : vector<32x128xf32>
    %12 = arith.truncf %11 : vector<32x128xf32> to vector<32x128xbf16>
    %c0_9 = arith.constant 0 : index
    %c0_10 = arith.constant 0 : index
    %c0_11 = arith.constant 0 : index
    %13 = vector.load %arg7[%c0_9, %c0_10, %c0_11] : memref<4x128x128xbf16, #tpu.memory_space<vmem>>, vector<1x128x128xbf16>
    %14 = vector.shape_cast %13 : vector<1x128x128xbf16> to vector<128x128xbf16>
    %cst_12 = arith.constant dense<0.000000e+00> : vector<32x128xf32>
    %15 = tpu.matmul %12, %14, %cst_12 {dimension_numbers = #tpu.dot_dimension_numbers<[1], [0], [0], [1], [0, 0, 1, 1], [], []>} : vector<32x128xbf16>, vector<128x128xbf16>, vector<32x128xf32> -> vector<32x128xf32>
    %c0_13 = arith.constant 0 : index
    %c0_14 = arith.constant 0 : index
    %c0_15 = arith.constant 0 : index
    %16 = vector.load %arg8[%c0_13, %c0_14, %c0_15] : memref<4x1x128xf32, #tpu.memory_space<vmem>>, vector<1x1x128xf32>
    %17 = vector.shape_cast %16 : vector<1x1x128xf32> to vector<1x128xf32>
    %18 = vector.broadcast %17 : vector<1x128xf32> to vector<32x128xf32>
    %19 = arith.addf %15, %18 : vector<32x128xf32>
    %c0_16 = arith.constant 0 : index
    %c0_17 = arith.constant 0 : index
    %c0_18 = arith.constant 0 : index
    %20 = vector.load %arg15[%c0_16, %c0_17, %c0_18] : memref<1x32x128xf32, #tpu.memory_space<vmem>>, vector<1x32x128xf32>
    %21 = vector.shape_cast %20 : vector<1x32x128xf32> to vector<32x128xf32>
    %22 = vector.shape_cast %19 : vector<32x128xf32> to vector<1x32x128xf32>
    tpu.vector_store %arg15[%c0_16, %c0_17, %c0_18], %22 {strides = array<i32>} : memref<1x32x128xf32, #tpu.memory_space<vmem>>, vector<1x32x128xf32>,
    %23 = arith.truncf %19 : vector<32x128xf32> to vector<32x128xbf16>
    %c0_19 = arith.constant 0 : index
    %c0_20 = arith.constant 0 : index
    %c0_21 = arith.constant 0 : index
    %24 = vector.load %arg2[%c0_19, %c0_20, %c0_21] : memref<1x16x128xf32, #tpu.memory_space<vmem>>, vector<1x16x128xf32>
    %25 = vector.shape_cast %24 : vector<1x16x128xf32> to vector<16x128xf32>
    %26 = arith.truncf %25 : vector<16x128xf32> to vector<16x128xbf16>
    %c1 = arith.constant 1 : index
    %c0_22 = arith.constant 0 : index
    %c0_23 = arith.constant 0 : index
    %27 = vector.load %arg5[%c1, %c0_22, %c0_23] : memref<4x128x128xbf16, #tpu.memory_space<vmem>>, vector<1x128x128xbf16>
    %28 = vector.shape_cast %27 : vector<1x128x128xbf16> to vector<128x128xbf16>
    %cst_24 = arith.constant dense<0.000000e+00> : vector<16x128xf32>
    %29 = tpu.matmul %26, %28, %cst_24 {dimension_numbers = #tpu.dot_dimension_numbers<[1], [0], [0], [1], [0, 0, 1, 1], [], []>} : vector<16x128xbf16>, vector<128x128xbf16>, vector<16x128xf32> -> vector<16x128xf32>
    %c1_25 = arith.constant 1 : index
    %c0_26 = arith.constant 0 : index
    %c0_27 = arith.constant 0 : index
    %30 = vector.load %arg6[%c1_25, %c0_26, %c0_27] : memref<4x1x128xf32, #tpu.memory_space<vmem>>, vector<1x1x128xf32>
    %31 = vector.shape_cast %30 : vector<1x1x128xf32> to vector<1x128xf32>
    %32 = vector.broadcast %31 : vector<1x128xf32> to vector<16x128xf32>
    %33 = arith.addf %29, %32 : vector<16x128xf32>
    %cst_28 = arith.constant 0.000000e+00 : f32
    %34 = vector.broadcast %cst_28 : f32 to vector<16x128xf32>
    %35 = arith.maximumf %33, %34 : vector<16x128xf32>
    %36 = arith.truncf %35 : vector<16x128xf32> to vector<16x128xbf16>
    %c1_29 = arith.constant 1 : index
    %c0_30 = arith.constant 0 : index
    %c0_31 = arith.constant 0 : index
    %37 = vector.load %arg7[%c1_29, %c0_30, %c0_31] : memref<4x128x128xbf16, #tpu.memory_space<vmem>>, vector<1x128x128xbf16>
    %38 = vector.shape_cast %37 : vector<1x128x128xbf16> to vector<128x128xbf16>
    %cst_32 = arith.constant dense<0.000000e+00> : vector<16x128xf32>
    %39 = tpu.matmul %36, %38, %cst_32 {dimension_numbers = #tpu.dot_dimension_numbers<[1], [0], [0], [1], [0, 0, 1, 1], [], []>} : vector<16x128xbf16>, vector<128x128xbf16>, vector<16x128xf32> -> vector<16x128xf32>
    %c1_33 = arith.constant 1 : index
    %c0_34 = arith.constant 0 : index
    %c0_35 = arith.constant 0 : index
    %40 = vector.load %arg8[%c1_33, %c0_34, %c0_35] : memref<4x1x128xf32, #tpu.memory_space<vmem>>, vector<1x1x128xf32>
    %41 = vector.shape_cast %40 : vector<1x1x128xf32> to vector<1x128xf32>
    %42 = vector.broadcast %41 : vector<1x128xf32> to vector<16x128xf32>
    %43 = arith.addf %39, %42 : vector<16x128xf32>
    %c0_36 = arith.constant 0 : index
    %c0_37 = arith.constant 0 : index
    %44 = vector.load %arg9[%c0_36, %c0_37] : memref<16x32xbf16, #tpu.memory_space<vmem>>, vector<16x32xbf16>
    %cst_38 = arith.constant dense<0.000000e+00> : vector<16x128xf32>
    %45 = tpu.matmul %44, %23, %cst_38 {dimension_numbers = #tpu.dot_dimension_numbers<[1], [0], [0], [1], [0, 0, 1, 1], [], []>} : vector<16x32xbf16>, vector<32x128xbf16>, vector<16x128xf32> -> vector<16x128xf32>
    %46 = arith.addf %43, %45 : vector<16x128xf32>
    %c0_39 = arith.constant 0 : index
    %c0_40 = arith.constant 0 : index
    %47 = vector.load %arg10[%c0_39, %c0_40] : memref<16x128xf32, #tpu.memory_space<vmem>>, vector<16x128xf32>
    %48 = arith.addf %46, %47 : vector<16x128xf32>
    %c0_41 = arith.constant 0 : index
    %c0_42 = arith.constant 0 : index
    %c0_43 = arith.constant 0 : index
    %49 = vector.load %arg16[%c0_41, %c0_42, %c0_43] : memref<1x16x128xf32, #tpu.memory_space<vmem>>, vector<1x16x128xf32>
    %50 = vector.shape_cast %49 : vector<1x16x128xf32> to vector<16x128xf32>
    %51 = vector.shape_cast %48 : vector<16x128xf32> to vector<1x16x128xf32>
    tpu.vector_store %arg16[%c0_41, %c0_42, %c0_43], %51 {strides = array<i32>} : memref<1x16x128xf32, #tpu.memory_space<vmem>>, vector<1x16x128xf32>,
    %52 = arith.truncf %48 : vector<16x128xf32> to vector<16x128xbf16>
    %c0_44 = arith.constant 0 : index
    %c0_45 = arith.constant 0 : index
    %c0_46 = arith.constant 0 : index
    %53 = vector.load %arg3[%c0_44, %c0_45, %c0_46] : memref<1x8x128xf32, #tpu.memory_space<vmem>>, vector<1x8x128xf32>
    %54 = vector.shape_cast %53 : vector<1x8x128xf32> to vector<8x128xf32>
    %55 = arith.truncf %54 : vector<8x128xf32> to vector<8x128xbf16>
    %c2 = arith.constant 2 : index
    %c0_47 = arith.constant 0 : index
    %c0_48 = arith.constant 0 : index
    %56 = vector.load %arg5[%c2, %c0_47, %c0_48] : memref<4x128x128xbf16, #tpu.memory_space<vmem>>, vector<1x128x128xbf16>
    %57 = vector.shape_cast %56 : vector<1x128x128xbf16> to vector<128x128xbf16>
    %cst_49 = arith.constant dense<0.000000e+00> : vector<8x128xf32>
    %58 = tpu.matmul %55, %57, %cst_49 {dimension_numbers = #tpu.dot_dimension_numbers<[1], [0], [0], [1], [0, 0, 1, 1], [], []>} : vector<8x128xbf16>, vector<128x128xbf16>, vector<8x128xf32> -> vector<8x128xf32>
    %c2_50 = arith.constant 2 : index
    %c0_51 = arith.constant 0 : index
    %c0_52 = arith.constant 0 : index
    %59 = vector.load %arg6[%c2_50, %c0_51, %c0_52] : memref<4x1x128xf32, #tpu.memory_space<vmem>>, vector<1x1x128xf32>
    %60 = vector.shape_cast %59 : vector<1x1x128xf32> to vector<1x128xf32>
    %61 = vector.broadcast %60 : vector<1x128xf32> to vector<8x128xf32>
    %62 = arith.addf %58, %61 : vector<8x128xf32>
    %cst_53 = arith.constant 0.000000e+00 : f32
    %63 = vector.broadcast %cst_53 : f32 to vector<8x128xf32>
    %64 = arith.maximumf %62, %63 : vector<8x128xf32>
    %65 = arith.truncf %64 : vector<8x128xf32> to vector<8x128xbf16>
    %c2_54 = arith.constant 2 : index
    %c0_55 = arith.constant 0 : index
    %c0_56 = arith.constant 0 : index
    %66 = vector.load %arg7[%c2_54, %c0_55, %c0_56] : memref<4x128x128xbf16, #tpu.memory_space<vmem>>, vector<1x128x128xbf16>
    %67 = vector.shape_cast %66 : vector<1x128x128xbf16> to vector<128x128xbf16>
    %cst_57 = arith.constant dense<0.000000e+00> : vector<8x128xf32>
    %68 = tpu.matmul %65, %67, %cst_57 {dimension_numbers = #tpu.dot_dimension_numbers<[1], [0], [0], [1], [0, 0, 1, 1], [], []>} : vector<8x128xbf16>, vector<128x128xbf16>, vector<8x128xf32> -> vector<8x128xf32>
    %c2_58 = arith.constant 2 : index
    %c0_59 = arith.constant 0 : index
    %c0_60 = arith.constant 0 : index
    %69 = vector.load %arg8[%c2_58, %c0_59, %c0_60] : memref<4x1x128xf32, #tpu.memory_space<vmem>>, vector<1x1x128xf32>
    %70 = vector.shape_cast %69 : vector<1x1x128xf32> to vector<1x128xf32>
    %71 = vector.broadcast %70 : vector<1x128xf32> to vector<8x128xf32>
    %72 = arith.addf %68, %71 : vector<8x128xf32>
    %c0_61 = arith.constant 0 : index
    %c0_62 = arith.constant 0 : index
    %73 = vector.load %arg11[%c0_61, %c0_62] : memref<8x16xbf16, #tpu.memory_space<vmem>>, vector<8x16xbf16>
    %cst_63 = arith.constant dense<0.000000e+00> : vector<8x128xf32>
    %74 = tpu.matmul %73, %52, %cst_63 {dimension_numbers = #tpu.dot_dimension_numbers<[1], [0], [0], [1], [0, 0, 1, 1], [], []>} : vector<8x16xbf16>, vector<16x128xbf16>, vector<8x128xf32> -> vector<8x128xf32>
    %75 = arith.addf %72, %74 : vector<8x128xf32>
    %c0_64 = arith.constant 0 : index
    %c0_65 = arith.constant 0 : index
    %76 = vector.load %arg12[%c0_64, %c0_65] : memref<8x128xf32, #tpu.memory_space<vmem>>, vector<8x128xf32>
    %77 = arith.addf %75, %76 : vector<8x128xf32>
    %c0_66 = arith.constant 0 : index
    %c0_67 = arith.constant 0 : index
    %c0_68 = arith.constant 0 : index
    %78 = vector.load %arg17[%c0_66, %c0_67, %c0_68] : memref<1x8x128xf32, #tpu.memory_space<vmem>>, vector<1x8x128xf32>
    %79 = vector.shape_cast %78 : vector<1x8x128xf32> to vector<8x128xf32>
    %80 = vector.shape_cast %77 : vector<8x128xf32> to vector<1x8x128xf32>
    tpu.vector_store %arg17[%c0_66, %c0_67, %c0_68], %80 {strides = array<i32>} : memref<1x8x128xf32, #tpu.memory_space<vmem>>, vector<1x8x128xf32>,
    %81 = arith.truncf %77 : vector<8x128xf32> to vector<8x128xbf16>
    %c0_69 = arith.constant 0 : index
    %c0_70 = arith.constant 0 : index
    %c0_71 = arith.constant 0 : index
    %82 = vector.load %arg4[%c0_69, %c0_70, %c0_71] : memref<1x8x128xf32, #tpu.memory_space<vmem>>, vector<1x8x128xf32>
    %83 = vector.shape_cast %82 : vector<1x8x128xf32> to vector<8x128xf32>
    %84 = arith.truncf %83 : vector<8x128xf32> to vector<8x128xbf16>
    %c3 = arith.constant 3 : index
    %c0_72 = arith.constant 0 : index
    %c0_73 = arith.constant 0 : index
    %85 = vector.load %arg5[%c3, %c0_72, %c0_73] : memref<4x128x128xbf16, #tpu.memory_space<vmem>>, vector<1x128x128xbf16>
    %86 = vector.shape_cast %85 : vector<1x128x128xbf16> to vector<128x128xbf16>
    %cst_74 = arith.constant dense<0.000000e+00> : vector<8x128xf32>
    %87 = tpu.matmul %84, %86, %cst_74 {dimension_numbers = #tpu.dot_dimension_numbers<[1], [0], [0], [1], [0, 0, 1, 1], [], []>} : vector<8x128xbf16>, vector<128x128xbf16>, vector<8x128xf32> -> vector<8x128xf32>
    %c3_75 = arith.constant 3 : index
    %c0_76 = arith.constant 0 : index
    %c0_77 = arith.constant 0 : index
    %88 = vector.load %arg6[%c3_75, %c0_76, %c0_77] : memref<4x1x128xf32, #tpu.memory_space<vmem>>, vector<1x1x128xf32>
    %89 = vector.shape_cast %88 : vector<1x1x128xf32> to vector<1x128xf32>
    %90 = vector.broadcast %89 : vector<1x128xf32> to vector<8x128xf32>
    %91 = arith.addf %87, %90 : vector<8x128xf32>
    %cst_78 = arith.constant 0.000000e+00 : f32
    %92 = vector.broadcast %cst_78 : f32 to vector<8x128xf32>
    %93 = arith.maximumf %91, %92 : vector<8x128xf32>
    %94 = arith.truncf %93 : vector<8x128xf32> to vector<8x128xbf16>
    %c3_79 = arith.constant 3 : index
    %c0_80 = arith.constant 0 : index
    %c0_81 = arith.constant 0 : index
    %95 = vector.load %arg7[%c3_79, %c0_80, %c0_81] : memref<4x128x128xbf16, #tpu.memory_space<vmem>>, vector<1x128x128xbf16>
    %96 = vector.shape_cast %95 : vector<1x128x128xbf16> to vector<128x128xbf16>
    %cst_82 = arith.constant dense<0.000000e+00> : vector<8x128xf32>
    %97 = tpu.matmul %94, %96, %cst_82 {dimension_numbers = #tpu.dot_dimension_numbers<[1], [0], [0], [1], [0, 0, 1, 1], [], []>} : vector<8x128xbf16>, vector<128x128xbf16>, vector<8x128xf32> -> vector<8x128xf32>
    %c3_83 = arith.constant 3 : index
    %c0_84 = arith.constant 0 : index
    %c0_85 = arith.constant 0 : index
    %98 = vector.load %arg8[%c3_83, %c0_84, %c0_85] : memref<4x1x128xf32, #tpu.memory_space<vmem>>, vector<1x1x128xf32>
    %99 = vector.shape_cast %98 : vector<1x1x128xf32> to vector<1x128xf32>
    %100 = vector.broadcast %99 : vector<1x128xf32> to vector<8x128xf32>
    %101 = arith.addf %97, %100 : vector<8x128xf32>
    %c0_86 = arith.constant 0 : index
    %c0_87 = arith.constant 0 : index
    %102 = vector.load %arg13[%c0_86, %c0_87] : memref<8x8xbf16, #tpu.memory_space<vmem>>, vector<8x8xbf16>
    %cst_88 = arith.constant dense<0.000000e+00> : vector<8x128xf32>
    %103 = tpu.matmul %102, %81, %cst_88 {dimension_numbers = #tpu.dot_dimension_numbers<[1], [0], [0], [1], [0, 0, 1, 1], [], []>} : vector<8x8xbf16>, vector<8x128xbf16>, vector<8x128xf32> -> vector<8x128xf32>
    %104 = arith.addf %101, %103 : vector<8x128xf32>
    %c0_89 = arith.constant 0 : index
    %c0_90 = arith.constant 0 : index
    %105 = vector.load %arg14[%c0_89, %c0_90] : memref<8x128xf32, #tpu.memory_space<vmem>>, vector<8x128xf32>
    %106 = arith.addf %104, %105 : vector<8x128xf32>
    %c0_91 = arith.constant 0 : index
    %c0_92 = arith.constant 0 : index
    %c0_93 = arith.constant 0 : index
    %107 = vector.load %arg18[%c0_91, %c0_92, %c0_93] : memref<1x8x128xf32, #tpu.memory_space<vmem>>, vector<1x8x128xf32>
    %108 = vector.shape_cast %107 : vector<1x8x128xf32> to vector<8x128xf32>
    %109 = vector.shape_cast %106 : vector<8x128xf32> to vector<1x8x128xf32>
    tpu.vector_store %arg18[%c0_91, %c0_92, %c0_93], %109 {strides = array<i32>} : memref<1x8x128xf32, #tpu.memory_space<vmem>>, vector<1x8x128xf32>,
    return
  }
  func.func @transform_0(%arg0: i32) -> (i32, i32, i32) {
    %c0_i32 = arith.constant 0 : i32
    %c0_i32_0 = arith.constant 0 : i32
    %c0_i32_1 = arith.constant 0 : i32
    return %arg0, %c0_i32, %c0_i32_0 : i32, i32, i32
  }
  func.func @transform_1(%arg0: i32) -> (i32, i32, i32) {
    %c0_i32 = arith.constant 0 : i32
    %c0_i32_0 = arith.constant 0 : i32
    %c0_i32_1 = arith.constant 0 : i32
    return %arg0, %c0_i32, %c0_i32_0 : i32, i32, i32
  }
  func.func @transform_2(%arg0: i32) -> (i32, i32, i32) {
    %c0_i32 = arith.constant 0 : i32
    %c0_i32_0 = arith.constant 0 : i32
    %c0_i32_1 = arith.constant 0 : i32
    return %arg0, %c0_i32, %c0_i32_0 : i32, i32, i32
  }
  func.func @transform_3(%arg0: i32) -> (i32, i32, i32) {
    %c0_i32 = arith.constant 0 : i32
    %c0_i32_0 = arith.constant 0 : i32
    %c0_i32_1 = arith.constant 0 : i32
    return %arg0, %c0_i32, %c0_i32_0 : i32, i32, i32
  }
  func.func @transform_4(%arg0: i32) -> (i32, i32, i32) {
    %c0_i32 = arith.constant 0 : i32
    %c0_i32_0 = arith.constant 0 : i32
    %c0_i32_1 = arith.constant 0 : i32
    %c0_i32_2 = arith.constant 0 : i32
    return %c0_i32, %c0_i32_0, %c0_i32_1 : i32, i32, i32
  }
  func.func @transform_5(%arg0: i32) -> (i32, i32, i32) {
    %c0_i32 = arith.constant 0 : i32
    %c0_i32_0 = arith.constant 0 : i32
    %c0_i32_1 = arith.constant 0 : i32
    %c0_i32_2 = arith.constant 0 : i32
    return %c0_i32, %c0_i32_0, %c0_i32_1 : i32, i32, i32
  }
  func.func @transform_6(%arg0: i32) -> (i32, i32, i32) {
    %c0_i32 = arith.constant 0 : i32
    %c0_i32_0 = arith.constant 0 : i32
    %c0_i32_1 = arith.constant 0 : i32
    %c0_i32_2 = arith.constant 0 : i32
    return %c0_i32, %c0_i32_0, %c0_i32_1 : i32, i32, i32
  }
  func.func @transform_7(%arg0: i32) -> (i32, i32, i32) {
    %c0_i32 = arith.constant 0 : i32
    %c0_i32_0 = arith.constant 0 : i32
    %c0_i32_1 = arith.constant 0 : i32
    %c0_i32_2 = arith.constant 0 : i32
    return %c0_i32, %c0_i32_0, %c0_i32_1 : i32, i32, i32
  }
  func.func @transform_8(%arg0: i32) -> (i32, i32) {
    %c0_i32 = arith.constant 0 : i32
    %c0_i32_0 = arith.constant 0 : i32
    %c0_i32_1 = arith.constant 0 : i32
    return %c0_i32, %c0_i32_0 : i32, i32
  }
  func.func @transform_9(%arg0: i32) -> (i32, i32) {
    %c0_i32 = arith.constant 0 : i32
    %c0_i32_0 = arith.constant 0 : i32
    %c0_i32_1 = arith.constant 0 : i32
    return %c0_i32, %c0_i32_0 : i32, i32
  }
  func.func @transform_10(%arg0: i32) -> (i32, i32) {
    %c0_i32 = arith.constant 0 : i32
    %c0_i32_0 = arith.constant 0 : i32
    %c0_i32_1 = arith.constant 0 : i32
    return %c0_i32, %c0_i32_0 : i32, i32
  }
  func.func @transform_11(%arg0: i32) -> (i32, i32) {
    %c0_i32 = arith.constant 0 : i32
    %c0_i32_0 = arith.constant 0 : i32
    %c0_i32_1 = arith.constant 0 : i32
    return %c0_i32, %c0_i32_0 : i32, i32
  }
  func.func @transform_12(%arg0: i32) -> (i32, i32) {
    %c0_i32 = arith.constant 0 : i32
    %c0_i32_0 = arith.constant 0 : i32
    %c0_i32_1 = arith.constant 0 : i32
    return %c0_i32, %c0_i32_0 : i32, i32
  }
  func.func @transform_13(%arg0: i32) -> (i32, i32) {
    %c0_i32 = arith.constant 0 : i32
    %c0_i32_0 = arith.constant 0 : i32
    %c0_i32_1 = arith.constant 0 : i32
    return %c0_i32, %c0_i32_0 : i32, i32
  }
  func.func @transform_14(%arg0: i32) -> (i32, i32, i32) {
    %c0_i32 = arith.constant 0 : i32
    %c0_i32_0 = arith.constant 0 : i32
    %c0_i32_1 = arith.constant 0 : i32
    return %arg0, %c0_i32, %c0_i32_0 : i32, i32, i32
  }
  func.func @transform_15(%arg0: i32) -> (i32, i32, i32) {
    %c0_i32 = arith.constant 0 : i32
    %c0_i32_0 = arith.constant 0 : i32
    %c0_i32_1 = arith.constant 0 : i32
    return %arg0, %c0_i32, %c0_i32_0 : i32, i32, i32
  }
  func.func @transform_16(%arg0: i32) -> (i32, i32, i32) {
    %c0_i32 = arith.constant 0 : i32
    %c0_i32_0 = arith.constant 0 : i32
    %c0_i32_1 = arith.constant 0 : i32
    return %arg0, %c0_i32, %c0_i32_0 : i32, i32, i32
  }
  func.func @transform_17(%arg0: i32) -> (i32, i32, i32) {
    %c0_i32 = arith.constant 0 : i32
    %c0_i32_0 = arith.constant 0 : i32
    %c0_i32_1 = arith.constant 0 : i32
    return %arg0, %c0_i32, %c0_i32_0 : i32, i32, i32
  }
}

</mosaic_0001>

<bundles_post_ra>
// kernel: tpu_custom_call.1
= control target key start
LH: loop header
LB: loop body
LE: loop exit
PB: predicated region body
PF: predicated region fallthrough
CT: control target
= control target key end

     0   :  { %s3696_s0 = inlined_call_operand.hbm [shape: f32[2,32,128], index: 0, kind: input, shape index: {}]   ;;  %s3697_s1 = inlined_call_operand.hbm [shape: f32[2,16,128], index: 1, kind: input, shape index: {}]   ;;  %s3698_s2 = inlined_call_operand.hbm [shape: f32[2,8,128], index: 2, kind: input, shape index: {}]   ;;  %s3699_s3 = inlined_call_operand.hbm [shape: f32[2,8,128], index: 3, kind: input, shape index: {}]   ;;  %s3700_s4 = inlined_call_operand.hbm [shape: bf16[4,128,128], index: 4, kind: input, shape index: {}]   ;;  %s3701_s5 = inlined_call_operand.hbm [shape: f32[4,1,128], index: 5, kind: input, shape index: {}]   ;;  %s3702_s6 = inlined_call_operand.hbm [shape: bf16[4,128,128], index: 6, kind: input, shape index: {}]   ;;  %s3703_s7 = inlined_call_operand.hbm [shape: f32[4,1,128], index: 7, kind: input, shape index: {}]   ;;  %s3704_s8 = inlined_call_operand.hbm [shape: bf16[16,32], index: 8, kind: input, shape index: {}]   ;;  %s3705_s9 = inlined_call_operand.hbm [shape: f32[16,128], index: 9, kind: input, shape index: {}]   ;;  %s3706_s10 = inlined_call_operand.hbm [shape: bf16[8,16], index: 10, kind: input, shape index: {}]   ;;  %s3707_s11 = inlined_call_operand.vmem [shape: f32[8,128], index: 11, kind: input, shape index: {}]   ;;  %s3708_s12 = inlined_call_operand.hbm [shape: bf16[8,8], index: 12, kind: input, shape index: {}]   ;;  %s3709_s13 = inlined_call_operand.hbm [shape: f32[8,128], index: 13, kind: input, shape index: {}]   ;;  %s3710_s14 = inlined_call_operand.hbm [shape: f32[2,32,128], index: 14, kind: output, shape index: {0}]   ;;  %s3711_s15 = inlined_call_operand.hbm [shape: f32[2,16,128], index: 15, kind: output, shape index: {1}]   ;;  %s3712_s16 = inlined_call_operand.hbm [shape: f32[2,8,128], index: 16, kind: output, shape index: {2}]   ;;  %s3713_s17 = inlined_call_operand.hbm [shape: f32[2,8,128], index: 17, kind: output, shape index: {3}]  }
   0x1   :  { %3735 = sst [smem:[#allocation45_spill]] %s3696_s0 }
   0x2   :  { %3736 = sst [smem:[#allocation46_spill]] %s3697_s1 }
   0x3   :  { %3737 = sst [smem:[#allocation47_spill]] %s3700_s4 }
   0x4   :  { %3738 = sst [smem:[#allocation48_spill]] %s3701_s5 }
   0x5   :  { %3739 = sst [smem:[#allocation49_spill]] %s3702_s6 }
   0x6   :  { %3740 = sst [smem:[#allocation50_spill]] %s3703_s7 }
   0x7   :  { %3741 = sst [smem:[#allocation51_spill]] %s3704_s8 }
   0x8   :  { %3742 = sst [smem:[#allocation52_spill]] %s3705_s9 }
   0x9   :  { %3743 = sst [smem:[#allocation53_spill]] %s3706_s10 }
   0xa   :  { %3744 = sst [smem:[#allocation54_spill]] %s3707_s11 }
   0xb   :  { %3745 = sst [smem:[#allocation55_spill]] %s3708_s12 }
   0xc   :  { %3746 = sst [smem:[#allocation56_spill]] %s3709_s13 }
   0xd   :  { %3747 = sst [smem:[#allocation57_spill]] %s3710_s14 }
   0xe   :  { %3748 = sst [smem:[#allocation58_spill]] %s3711_s15 }
   0xf   :  { %3749 = sst [smem:[#allocation59_spill]] %s3712_s16 }
  0x10   :  { %3750 = sst [smem:[#allocation60_spill]] %s3713_s17 }
  0x11   :  { %23 = vsyncpa [#allocation3], 0 }
  0x12   :  { %25 = vsyncpa [#allocation3 + $0x1], 0 }
  0x13   :  { %26 = vsyncpa [#allocation6], 0 }
  0x14   :  { %28 = vsyncpa [#allocation6 + $0x1], 0 }
  0x15   :  { %29 = vsyncpa [#allocation9], 0 }
  0x16   :  { %31 = vsyncpa [#allocation9 + $0x1], 0 }
  0x17   :  { %32 = vsyncpa [#allocation12], 0 }
  0x18   :  { %33 = vsyncpa [#allocation15], 0 }
  0x19   :  { %34 = vsyncpa [#allocation18], 0 }
  0x1a   :  { %35 = vsyncpa [#allocation21], 0 }
  0x1b   :  { %36 = vsyncpa [#allocation4], 0 }
  0x1c   :  { %38 = vsyncpa [#allocation4 + $0x1], 0 }
  0x1d   :  { %39 = vsyncpa [#allocation25], 0 }
  0x1e   :  { %41 = vsyncpa [#allocation25 + $0x1], 0 }
  0x1f   :  { %42 = vsyncpa [#allocation28], 0 }
  0x20   :  { %44 = vsyncpa [#allocation28 + $0x1], 0  ;;  %s3294_s24 = smov 0   ;;  %s3296_s25 = smov 0  }
  0x21   :  { %s3298_s26 = smov 0   ;;  %s3300_s27 = smov 0  }
  0x22 LB: > { %3751 = sst [smem:[#allocation40_spill]] %s3173_s24  ;;  %s3318_s30 = sadd.s32 4294967295, %s3185_s27   ;;  %s3185_s27 = sphi %s3300_s27, %s3799_s27   ;;  %s3181_s26 = sphi %s3298_s26, %s3801_s26   ;;  %s3177_s25 = sphi %s3296_s25, %s3803_s25   ;;  %s3173_s24 = sphi %s3294_s24, %s3802_s24  }
  0x23   : > { %3752 = sst [smem:[#allocation41_spill]] %s3181_s26  ;;  %p2043_p0 = scmp.ge.s32.totalorder %s3185_s27, 1 }
  0x24   : > { %s3753_s4 = sld [smem:[#allocation47_spill]]  ;;  %p3734_p1 = scmp.eq.s32.totalorder %s3318_s30, 0 }
  0x25   : > { %p473_p2 = scmp.lt.s32.totalorder %s3185_s27, 3  ;;  %s3187_s19 = smov [#allocation10]  }
  0x26   : > { %s486_s1 = sshll.u32 %s3187_s19, 4  ;;  %s3755_s5 = sld [smem:[#allocation48_spill]]  ;;  %s487_s1 = int_to_ptr.vmem [resolvable:$true] %s486_s1 }
  0x27   : > { %p3323_p3 = pnand %p2043_p0, %p473_p2  ;;  %s3188_s28 = smov [#allocation11]  }
  0x28   : > { %s500_s29 = sshll.u32 %s3188_s28, 4  ;;  %s3720_s19 = smov 64   ;;  %s501_s29 = int_to_ptr.vmem [resolvable:$true] %s500_s29 }
  0x29   : > { %p2478_p4 = pneg %p3323_p3  ;;  %s3191_s20 = smov 16  }
  0x2a   : > { %s484_s0 = sshll.u32 %s3753_s4, 4  ;;  %s3722_s4 = smov 4   ;;  %s485_s0 = int_to_ptr.hbm [resolvable:$true] %s484_s0 }
  0x2b   : > { %p3335_p6 = pnand %p2478_p4, %p3734_p1  ;;  %s3192_s21 = smov 1  }
  0x2c   : > { %s498_s22 = sshll.u32 %s3755_s5, 4  ;;  %s3757_s7 = sld [smem:[#allocation50_spill]]  ;;  %s499_s22 = int_to_ptr.hbm [resolvable:$true] %s498_s22 }
  0x2d   : > { %2481 = dma.hbm_to_vmem [thread:$0]  (!%p3335_p6), %s485_s0, 4096, %s487_s1, [#allocation9], %s3720_s19, %s3720_s19, %s3722_s4  }
  0x2e   : > { %2484 = dma.hbm_to_vmem [thread:$0]  (!%p3335_p6), %s499_s22, 64, %s501_s29, [#allocation12], %s3191_s20, %s3191_s20, %s3192_s21  }
  0x2f   : > { %s3193_s14 = smov [#allocation14]   ;;  %s3758_s9 = sld [smem:[#allocation52_spill]] }
  0x30   : > { %s528_s28 = sshll.u32 %s3193_s14, 4  ;;  %s3194_s1 = smov [#allocation17]   ;;  %s529_s28 = int_to_ptr.vmem [resolvable:$true] %s528_s28 }
  0x31   : > { %s556_s5 = sshll.u32 %s3194_s1, 4  ;;  %s3725_s14 = smov 128   ;;  %s557_s5 = int_to_ptr.vmem [resolvable:$true] %s556_s5 }
  0x32   : > { %s526_s16 = sshll.u32 %s3757_s7, 4  ;;  %s3727_s17 = smov 8   ;;  %s527_s16 = int_to_ptr.hbm [resolvable:$true] %s526_s16 }
  0x33   : > { %2490 = dma.hbm_to_vmem [thread:$0]  (!%p3335_p6), %s527_s16, 64, %s529_s28, [#allocation15], %s3191_s20, %s3191_s20, %s3192_s21  }
  0x34   : > { %s3759_s12 = sld [smem:[#allocation55_spill]]  ;;  %s3197_s22 = smov [#allocation20]  }
  0x35   : > { %s554_s0 = sshll.u32 %s3758_s9, 4  ;;  %s586_s29 = sshll.u32 %s3197_s22, 4  ;;  %s555_s0 = int_to_ptr.hbm [resolvable:$true] %s554_s0  ;;  %s587_s29 = int_to_ptr.vmem [resolvable:$true] %s586_s29 }
  0x36   : > { %2496 = dma.hbm_to_vmem [thread:$0]  (!%p3335_p6), %s555_s0, 256, %s557_s5, [#allocation18], %s3725_s14, %s3725_s14, %s3727_s17  }
  0x37   : > { %s3724_s20 = sadd.s32 4294967294, %s3185_s27   ;;  %s3366_s21 = sadd.s32 1, %s3185_s27  }
  0x38   : > { %3760 = sst [smem:[#allocation42_spill]] %s3366_s21  ;;  %s57_s28 = sadd.s32 1, %s3181_s26 }
  0x39   : > { %s54_s0 = ssub.s32 %s3185_s27, %s3366_s21  ;;  %p64_p7 = scmp.ne.s32.totalorder %s3181_s26, %s3177_s25 }
  0x3a   : > { %s584_s16 = sshll.u32 %s3759_s12, 4  ;;  %p55_p8 = scmp.eq.s32.totalorder %s54_s0, 0  ;;  %s585_s16 = int_to_ptr.hbm [resolvable:$true] %s584_s16 }
  0x3b   : > { %2502 = dma.hbm_to_vmem [thread:$0]  (!%p3335_p6), %s585_s16, 64, %s587_s29, [#allocation21]  }
  0x3c   : > { %p65_p9 = scmp.eq.s32.totalorder %s3185_s27, 0  ;;  %p70_p10 = scmp.ne.s32.totalorder %s3177_s25, %s3173_s24 }
  0x3d   : > { %p382_p11 = scmp.eq.s32.totalorder %s3318_s30, 1  ;;  %p388_p2 = scmp.eq.s32.totalorder %s3724_s20, 1 }
  0x3e   : > { %s3378_s1 = scalar_select %p55_p8, %s3181_s26, %s57_s28  }
  0x3f   : > { %p66_p12 = por %p65_p9, %p64_p7  ;;  %p3382_p13 = por %p3734_p1, %p70_p10 }
  0x40   : > { %3761 = sst [smem:[#allocation43_spill]] %s3378_s1  ;;  %p3386_p0 = por %p382_p11, %p64_p7 }
  0x41   : > { %p2541_p4 = scmp.lt.s32.totalorder %s3185_s27, 2  ;;  %s3394_s15 = sand.u32 1, %s3181_s26  }
  0x42   : > { %p3396_p5 = por %p388_p2, %p70_p10  ;;  %s2057_s28 = sshll.u32 %s3394_s15, 4 }
  0x43   : > { %p3401_p8 = pnand %p2541_p4, %p66_p12  ;;  %s2358_s0 = sshll.u32 %s3185_s27, 4 }
  0x44   : > { %s3764_s16 = scalar_select %p3396_p5, 1, 0 }
  0x45   : > { %s3767_s20 = sld [smem:[#allocation46_spill]]  ;;  %s635_s17 = scalar_lea.vmem [#allocation5], %s2057_s28 }
  0x46   : > { %3765 = sst [smem:[#allocation44_spill]] %s3764_s16  ;;  %s643_s7 = sshll.u32 %s635_s17, 4  ;;  %s644_s7 = int_to_ptr.vmem [resolvable:$true] %s643_s7 }
  0x47   : > { %s3768_s6 = sld [smem:[#allocation49_spill]]  ;;  %s3769_s26 = sand.u32 1, %s3185_s27  }
  0x48   : > { %s3415_s21 = scalar_lea.sflag [#allocation6], %s3769_s26  ;;  %p2763_p9 = pneg %p3401_p8 }
  0x4b   : > { %s640_s14 = scalar_lea.hbm %s3767_s20, %s2358_s0 }
  0x4c   : > { %s641_s9 = sshll.u32 %s640_s14, 4  ;;  %s2766_s14 = scalar_lea.hbm %s3767_s20, 32  ;;  %s642_s9 = int_to_ptr.hbm [resolvable:$true] %s641_s9 }
  0x4d   : > { %s512_s22 = sshll.u32 %s3768_s6, 4  ;;  %s2759_s16 = sshra.s32 %s642_s9, 4  ;;  %s2760_s16 = int_to_ptr.hbm [resolvable:$true] %s2759_s16  ;;  %s513_s22 = int_to_ptr.hbm [resolvable:$true] %s512_s22 }
  0x4e   : > { %s2761_s24 = scalar_lea.hbm %s2760_s16, 16  ;;  %p2767_p12 = scmp.lt.s32.totalorder %s2760_s16, %s3767_s20 }
  0x4f   : > { %p2762_p7 = scmp.ne.s32.totalorder %s2760_s16, %s2761_s24  ;;  %p2768_p2 = scmp.lt.s32.totalorder %s2766_s14, %s2761_s24 }
  0x51   : > { %p2764_p10 = pnand %p2763_p9, %p2762_p7  ;;  %p2769_p4 = por %p2768_p2, %p2767_p12 }
  0x53   : > { %p2765_p11 = pneg %p2764_p10 }
  0x55   : > { %p2770_p1 = pnand %p2769_p4, %p2765_p11 }
  0x57   : > { %2773 = shalt.err (!%p2770_p1)
}
  0x58   : > { %s3770_s26 = smov 8   ;;  %s3771_s1 = smov 128  }
  0x59   : > { %2512 = dma.hbm_to_vmem [thread:$0]  (!%p3401_p8), %s642_s9, 256, %s644_s7, %s3415_s21, %s3771_s1, %s3771_s1, %s3770_s26  }
  0x5a   : > { %s3198_s28 = smov [#allocation13]   ;;  %s3772_s8 = sld [smem:[#allocation51_spill]] }
  0x5b   : > { %s514_s0 = sshll.u32 %s3198_s28, 4  ;;  %s3773_s16 = smov 4   ;;  %s515_s0 = int_to_ptr.vmem [resolvable:$true] %s514_s0 }
  0x5c   : > { %s3774_s14 = smov 64   ;;  %s3775_s10 = sld [smem:[#allocation53_spill]] }
  0x5d   : > { %2487 = dma.hbm_to_vmem [thread:$0]  (!%p3335_p6), %s513_s22, 4096, %s515_s0, [#allocation12], %s3774_s14, %s3774_s14, %s3773_s16  }
  0x5e   : > { %s3199_s9 = smov [#allocation16]   ;;  %s3200_s4 = smov [#allocation19]  }
  0x5f   : > { %s542_s28 = sshll.u32 %s3199_s9, 4  ;;  %s571_s19 = sshll.u32 %s3200_s4, 4  ;;  %s543_s28 = int_to_ptr.vmem [resolvable:$true] %s542_s28  ;;  %s572_s19 = int_to_ptr.vmem [resolvable:$true] %s571_s19 }
  0x60   : > { %s540_s24 = sshll.u32 %s3772_s8, 4  ;;  %s3776_s13 = sld [smem:[#allocation56_spill]]  ;;  %s541_s24 = int_to_ptr.hbm [resolvable:$true] %s540_s24 }
  0x61   : > { %2493 = dma.hbm_to_vmem [thread:$0]  (!%p3335_p6), %s541_s24, 128, %s543_s28, [#allocation15], %s3774_s14, %s3774_s14, %s3773_s16  }
  0x62   : > { %s569_s7 = sshll.u32 %s3775_s10, 4  ;;  %s3201_s0 = smov [#allocation22]   ;;  %s570_s7 = int_to_ptr.hbm [resolvable:$true] %s569_s7 }
  0x63   : > { %2499 = dma.hbm_to_vmem [thread:$0]  (!%p3335_p6), %s570_s7, 64, %s572_s19, [#allocation18]  }
  0x64   : > { %s598_s17 = sshll.u32 %s3201_s0, 4  ;;  %s2054_s12 = sshll.u32 %s3394_s15, 5  ;;  %s599_s17 = int_to_ptr.vmem [resolvable:$true] %s598_s17 }
  0x65   : > { %s2357_s24 = sshll.u32 %s3185_s27, 5  ;;  %s613_s16 = scalar_lea.vmem [#allocation2], %s2054_s12 }
  0x66   : > { %s596_s22 = sshll.u32 %s3776_s13, 4  ;;  %s621_s14 = sshll.u32 %s613_s16, 4  ;;  %s597_s22 = int_to_ptr.hbm [resolvable:$true] %s596_s22  ;;  %s622_s14 = int_to_ptr.vmem [resolvable:$true] %s621_s14 }
  0x67   : > { %2505 = dma.hbm_to_vmem [thread:$0]  (!%p3335_p6), %s597_s22, 128, %s599_s17, [#allocation21]  }
  0x68   : > { %s3777_s6 = sld [smem:[#allocation45_spill]]  ;;  %s2060_s10 = sshll.u32 %s3394_s15, 3 }
  0x69   : > { %s610_s13 = scalar_lea.sflag [#allocation3], %s3394_s15 }
  0x6e   : > { %s618_s8 = scalar_lea.hbm %s3777_s6, %s2357_s24  ;;  %s2916_s0 = scalar_lea.hbm %s3777_s6, 64 }
  0x6f   : > { %s619_s4 = sshll.u32 %s618_s8, 4  ;;  %s620_s4 = int_to_ptr.hbm [resolvable:$true] %s619_s4 }
  0x70   : > { %s2909_s7 = sshra.s32 %s620_s4, 4  ;;  %s2910_s7 = int_to_ptr.hbm [resolvable:$true] %s2909_s7 }
  0x71   : > { %s2911_s19 = scalar_lea.hbm %s2910_s7, 32  ;;  %p2917_p10 = scmp.lt.s32.totalorder %s2910_s7, %s3777_s6 }
  0x72   : > { %p2912_p1 = scmp.ne.s32.totalorder %s2910_s7, %s2911_s19  ;;  %p2918_p11 = scmp.lt.s32.totalorder %s2916_s0, %s2911_s19 }
  0x74   : > { %p2914_p7 = pnand %p2912_p1, %p2763_p9  ;;  %p2919_p12 = por %p2918_p11, %p2917_p10 }
  0x76   : > { %p2915_p6 = pneg %p2914_p7 }
  0x78   : > { %p2920_p2 = pnand %p2919_p12, %p2915_p6 }
  0x7a   : > { %2923 = shalt.err (!%p2920_p2)
}
  0x7b   : > { %2509 = dma.hbm_to_vmem [thread:$0]  (!%p3401_p8), %s620_s4, 512, %s622_s14, %s610_s13, %s3771_s1, %s3771_s1, %s3770_s26  }
  0x7c   : > { %s2061_s24 = sshll.u32 %s3185_s27, 3  ;;  %s657_s16 = scalar_lea.vmem [#allocation7], %s2060_s10 }
  0x7d   : > { %s665_s9 = sshll.u32 %s657_s16, 4  ;;  %s661_s7 = scalar_lea.hbm %s3698_s2, %s2061_s24  ;;  %s666_s9 = int_to_ptr.vmem [resolvable:$true] %s665_s9 }
  0x7e   : > { %s663_s19 = sshll.u32 %s661_s7, 4  ;;  %s2946_s1 = scalar_lea.hbm %s3698_s2, 16  ;;  %s664_s19 = int_to_ptr.hbm [resolvable:$true] %s663_s19 }
  0x7f   : > { %s2939_s23 = sshra.s32 %s664_s19, 4  ;;  %s2940_s23 = int_to_ptr.hbm [resolvable:$true] %s2939_s23 }
  0x80   : > { %s2941_s22 = scalar_lea.hbm %s2940_s23, 8  ;;  %p2947_p6 = scmp.lt.s32.totalorder %s2940_s23, %s3698_s2 }
  0x81   : > { %p2942_p4 = scmp.ne.s32.totalorder %s2940_s23, %s2941_s22  ;;  %p2948_p10 = scmp.lt.s32.totalorder %s2946_s1, %s2941_s22 }
  0x83   : > { %p2944_p1 = pnand %p2942_p4, %p2763_p9  ;;  %p2949_p11 = por %p2948_p10, %p2947_p6 }
  0x85   : > { %p2945_p7 = pneg %p2944_p1 }
  0x87   : > { %p2950_p12 = pnand %p2949_p11, %p2945_p7 }
  0x89   : > { %2953 = shalt.err (!%p2950_p12)
}
  0x8a   : > { %2515 = dma.hbm_to_vmem [thread:$0]  (!%p3401_p8), %s664_s19, 128, %s666_s9, %s3415_s21  }
  0x8b   : > { %s680_s12 = scalar_lea.hbm %s3699_s3, %s2061_s24  ;;  %s676_s16 = scalar_lea.vmem [#allocation8], %s2060_s10 }
  0x8c   : > { %s684_s28 = sshll.u32 %s676_s16, 4  ;;  %s682_s8 = sshll.u32 %s680_s12, 4  ;;  %s685_s28 = int_to_ptr.vmem [resolvable:$true] %s684_s28  ;;  %s683_s8 = int_to_ptr.hbm [resolvable:$true] %s682_s8 }
  0x8d   : > { %s3778_s7 = sand.u32 1, %s3185_s27   ;;  %s2969_s22 = sshra.s32 %s683_s8, 4  ;;  %s2970_s22 = int_to_ptr.hbm [resolvable:$true] %s2969_s22 }
  0x8e   : > { %s673_s23 = scalar_lea.sflag [#allocation9], %s3778_s7  ;;  %s2971_s13 = scalar_lea.hbm %s2970_s22, 8 }
  0x8f   : > { %p2972_p2 = scmp.ne.s32.totalorder %s2970_s22, %s2971_s13  ;;  %s2976_s24 = scalar_lea.hbm %s3699_s3, 16 }
  0x90   : > { %p2977_p7 = scmp.lt.s32.totalorder %s2970_s22, %s3699_s3  ;;  %p2978_p6 = scmp.lt.s32.totalorder %s2976_s24, %s2971_s13 }
  0x91   : > { %p2974_p4 = pnand %p2972_p2, %p2763_p9 }
  0x92   : > { %p2979_p10 = por %p2978_p6, %p2977_p7 }
  0x93   : > { %p2975_p1 = pneg %p2974_p4 }
  0x95   : > { %p2980_p11 = pnand %p2979_p10, %p2975_p1 }
  0x97   : > { %2983 = shalt.err (!%p2980_p11)
}
  0x98   : > { %2518 = dma.hbm_to_vmem [thread:$0]  (!%p3401_p8), %s683_s8, 128, %s685_s28, %s673_s23  }
  0x99   : > { %693 = sbr.rel (%p3323_p3) target bundleno = 939 (0x3ab), region = 76  ;;  %s3517_s19 = sand.u32 (!%p3323_p3), 1, %s3177_s25  }
  0x9a   : > { %s2065_s26 = sshll.u32 (!%p3323_p3), %s3517_s19, 5  ;;  %s696_s1 = scalar_lea.sflag (!%p3323_p3), [#allocation3], %s3517_s19 }
  0x9b   : > { %s3523_s14 = scalar_lea.vmem (!%p3323_p3), [#allocation2], %s2065_s26 }
  0x9e   : > { %3128 = dma.done.wait (%p3382_p13), %s696_s1, 512  }
  0x9f   : > { %3130 = vsyncadd (%p3382_p13), %s696_s1, 4294966784  ;;  %s3530_s18 = sand.u32 1, %s3318_s30   ;;  %s2066_s29 = sshll.u32 %s3517_s19, 4 }
  0xa0   : > { %s706_s4 = scalar_lea.sflag [#allocation6], %s3530_s18  ;;  %s3536_s0 = scalar_lea.vmem [#allocation5], %s2066_s29 }
  0xa1   : > { %3132 = dma.done.wait (%p3382_p13), %s706_s4, 384  }
  0xa2   : > { %3134 = vsyncadd (%p3382_p13), %s706_s4, 4294966912  ;;  %s3543_s17 = sshll.u32 %s3517_s19, 3  ;;  %s726_s16 = scalar_lea.sflag [#allocation9], %s3530_s18 }
  0xa3   : > { %s719_s12 = scalar_lea.vmem [#allocation7], %s3543_s17  ;;  %s729_s28 = scalar_lea.vmem [#allocation8], %s3543_s17 }
  0xa4   : > { %3136 = dma.done.wait (%p3382_p13), %s726_s16, 128  }
  0xa5   : > { %3138 = vsyncadd (%p3382_p13), %s726_s16, 4294967168  ;;  %p3779_p3 = scmp.eq.s32.totalorder %s3318_s30, 0 }
  0xa7   : > { %3140 = dma.done.wait (%p3779_p3), [#allocation9], 4096   ;;  %p3780_p8 = pmov %p3779_p3 }
  0xa8   : > { %p3781_p9 = pmov %p3779_p3 }
  0xa9   : > { %3142 = vsyncadd (%p3780_p8), [#allocation9], 4294963200 }
  0xaa   : > { %3144 = dma.done.wait (%p3781_p9), [#allocation12], 4160   ;;  %p3782_p12 = pmov %p3779_p3 }
  0xab   : > { %p3783_p2 = pmov %p3779_p3 }
  0xac   : > { %3146 = vsyncadd (%p3782_p12), [#allocation12], 4294963136 }
  0xad   : > { %3148 = dma.done.wait (%p3783_p2), [#allocation15], 192   ;;  %p3784_p4 = pmov %p3783_p2 }
  0xae   : > { %p3785_p13 = pmov %p3783_p2 }
  0xaf   : > { %3150 = vsyncadd (%p3784_p4), [#allocation15], 4294967104 }
  0xb0   : > { %3152 = dma.done.wait (%p3785_p13), [#allocation18], 320   ;;  %p3786_p1 = pmov %p3783_p2 }
  0xb2   : > { %3154 = vsyncadd (%p3786_p1), [#allocation18], 4294966976  ;;  %p3787_p7 = pmov %p3786_p1 }
  0xb3   : > { %p3788_p6 = pmov %p3786_p1 }
  0xb4   : > { %3156 = dma.done.wait (%p3787_p7), [#allocation21], 192  }
  0xb5   : > { %3158 = vsyncadd (%p3788_p6), [#allocation21], 4294967104  ;;  %v2366_v0 = vld [vmem:[#allocation10 + $0x38] sm:$0xff]  ;;  %v2365_v1 = vld [vmem:[#allocation10 + $0x30] sm:$0xff]  ;;  %s3580_s5 = scalar_lea.vmem [#allocation23], %s2065_s26  ;;  %vm1230_vm0 = vcmask 261120  }
  0xb6   : > { %931 = vmatpush.bf16.msra.mxu0 %v2366_v0  ;;  %v2364_v2 = vld [vmem:[#allocation10 + $0x28] sm:$0xff]  ;;  %v2363_v3 = vld [vmem:[#allocation10 + $0x20] sm:$0xff]  ;;  %v2362_v4 = vld [vmem:[#allocation10 + $0x18] sm:$0xff]  ;;  %s3592_s8 = scalar_lea.vmem [#allocation24], %s2066_s29  ;;  %vm1428_vm1 = vcmask 130048   ;;  %s3789_s22 = sld [smem:[#allocation54_spill]] }
  0xb7   : > { %v2382_v5 = vld [vmem:[#allocation10 + $0x78] sm:$0xff]  ;;  %v2361_v7 = vld [vmem:[#allocation10 + $0x10] sm:$0xff]  ;;  %v2360_v10 = vld [vmem:[#allocation10 + $0x8] sm:$0xff]  ;;  %vm1625_vm2 = vcmask 1043456   ;;  %s848_s13 = scalar_lea.vmem [#allocation26], %s3543_s17  ;;  %s1674_s21 = sshll.u32 %s3580_s5, 4  ;;  %s3604_s21 = int_to_ptr.vmem [resolvable:$true] %s1674_s21 }
  0xb8   : > { %v2374_v6 = vld [vmem:[#allocation13 + $0x38] sm:$0xff]  ;;  %1122 = vmatpush.bf16.msra.mxu2 %v2382_v5  ;;  %v2381_v8 = vld [vmem:[#allocation10 + $0x70] sm:$0xff]  ;;  %v2380_v11 = vld [vmem:[#allocation10 + $0x68] sm:$0xff]  ;;  %s1691_s9 = sshll.u32 %s3592_s8, 4  ;;  %vm1621_vm3 = vcmask 64512   ;;  %s2425_s24 = sshll.u32 %s3318_s30, 4  ;;  %s1692_s9 = int_to_ptr.vmem [resolvable:$true] %s1691_s9 }
  0xb9   : > { %1024 = vmatpush.bf16.msra.mxu1 %v2374_v6  ;;  %v2373_v9 = vld [vmem:[#allocation13 + $0x30] sm:$0xff]  ;;  %v2372_v12 = vld [vmem:[#allocation13 + $0x28] sm:$0xff]  ;;  %v2359_v13 = vld [vmem:[#allocation10] sm:$0xff]  ;;  %s3790_s26 = sld [smem:[#allocation58_spill]]  ;;  %s2424_s29 = sshll.u32 %s3318_s30, 5 }
  0xba   : > { %932 = vmatpush.bf16.msra.mxu0 %v2365_v1  ;;  %v857_v14 = vld [vmem:[%s3523_s14] sm:$0xff]  ;;  %v858_v15 = vld [vmem:[%s3523_s14 + $0x8] sm:$0xff]  ;;  %v2378_v19 = vld [vmem:[#allocation10 + $0x58] sm:$0xff]  ;;  %s3792_s16 = sld [smem:[#allocation57_spill]] }
  0xbb   : > { %v2379_v16 = vld [vmem:[#allocation10 + $0x60] sm:$0xff]  ;;  %v861_v18 = vpack.c.bf16 %v858_v15, %v857_v14  ;;  %v859_v20 = vld [vmem:[%s3523_s14 + $0x10] sm:$0xff]  ;;  %v860_v21 = vld [vmem:[%s3523_s14 + $0x18] sm:$0xff] }
  0xbc   : > { %1123 = vmatpush.bf16.msra.mxu2 %v2381_v8  ;;  %v2371_v17 = vld [vmem:[#allocation13 + $0x20] sm:$0xff]  ;;  %v862_v22 = vpack.c.bf16 %v860_v21, %v859_v20  ;;  %v2370_v23 = vld [vmem:[#allocation13 + $0x18] sm:$0xff]  ;;  %v2377_v24 = vld [vmem:[#allocation10 + $0x50] sm:$0xff] }
  0xbd   : > { %1025 = vmatpush.bf16.msra.mxu1 %v2373_v9  ;;  %v2369_v25 = vld [vmem:[#allocation13 + $0x10] sm:$0xff]  ;;  %v2376_v26 = vld [vmem:[#allocation10 + $0x48] sm:$0xff]  ;;  %v2375_v28 = vld [vmem:[#allocation10 + $0x40] sm:$0xff] }
  0xbe   : > { %933 = vmatpush.bf16.msra.mxu0 %v2364_v2  ;;  %v2368_v27 = vld [vmem:[#allocation13 + $0x8] sm:$0xff]  ;;  %v2367_v31 = vld [vmem:[#allocation13] sm:$0xff]  ;;  %v2390_v33 = vld [vmem:[#allocation13 + $0x78] sm:$0xff] }
  0xbf   : > { %v1049_v29 = vld [vmem:[%s3536_s0] sm:$0xff]  ;;  %v1050_v30 = vld [vmem:[%s3536_s0 + $0x8] sm:$0xff]  ;;  %1209 = vmatpush.bf16.msra.mxu3 %v2390_v33  ;;  %s3791_s1 = smov %s3790_s26  ;;  %s1690_s14 = scalar_lea.hbm %s3790_s26, %s2425_s24 }
  0xc0   : > { %1124 = vmatpush.bf16.msra.mxu2 %v2380_v11  ;;  %v1051_v32 = vpack.c.bf16 %v1050_v30, %v1049_v29  ;;  %v2389_v35 = vld [vmem:[#allocation13 + $0x70] sm:$0xff]  ;;  %v2601_v36 = vld [vmem:[#allocation11] ss:$0 sm:$0xff]  ;;  %v2388_v37 = vld [vmem:[#allocation13 + $0x68] sm:$0xff]  ;;  %s1693_s4 = sshll.u32 %s1690_s14, 4  ;;  %s3019_s15 = scalar_lea.hbm %s3791_s1, 32  ;;  %s1694_s4 = int_to_ptr.hbm [resolvable:$true] %s1693_s4 }
  0xc1   : > { %1026 = vmatpush.bf16.msra.mxu1 %v2372_v12  ;;  %v2387_v41 = vld [vmem:[#allocation13 + $0x60] sm:$0xff]  ;;  %v2386_v52 = vld [vmem:[#allocation13 + $0x58] sm:$0xff]  ;;  %v2385_v54 = vld [vmem:[#allocation13 + $0x50] sm:$0xff] }
  0xc2   : > { %934 = vmatpush.bf16.msra.mxu0 %v2363_v3  ;;  %v2603_v55 = vld [vmem:[#allocation11 + $0x1] ss:$0 sm:$0xff]  ;;  %v2384_v57 = vld [vmem:[#allocation13 + $0x48] sm:$0xff]  ;;  %v2383_v59 = vld [vmem:[#allocation13 + $0x40] sm:$0xff] }
  0xc3   : > { %1210 = vmatpush.bf16.msra.mxu3 %v2389_v35  ;;  %v2399_v0 = vld [vmem:[#allocation10 + $0xb8] sm:$0xff]  ;;  %v2398_v1 = vld [vmem:[#allocation10 + $0xb0] sm:$0xff]  ;;  %v2397_v2 = vld [vmem:[#allocation10 + $0xa8] sm:$0xff] }
  0xc4   : > { %1125 = vmatpush.bf16.msra.mxu2 %v2379_v16  ;;  %v2396_v3 = vld [vmem:[#allocation10 + $0xa0] sm:$0xff]  ;;  %v2395_v6 = vld [vmem:[#allocation10 + $0x98] sm:$0xff]  ;;  %v2394_v8 = vld [vmem:[#allocation10 + $0x90] sm:$0xff] }
  0xc5   : > { %1027 = vmatpush.bf16.msra.mxu1 %v2371_v17  ;;  %v2393_v9 = vld [vmem:[#allocation10 + $0x88] sm:$0xff]  ;;  %v2392_v12 = vld [vmem:[#allocation10 + $0x80] sm:$0xff] }
  0xc6   : > { %935 = vmatpush.bf16.msra.mxu0 %v2362_v4  ;;  %v2602_v4 = vld [vmem:[#allocation14] ss:$0 sm:$0xff]  ;;  %v2391_v21 = vld [vmem:[#allocation16] sm:$0xff]  ;;  %v2403_v29 = vld [vmem:[#allocation13 + $0x98] sm:$0xff] }
  0xc7   : > { %1211 = vmatpush.bf16.msra.mxu3 %v2388_v37  ;;  %v2412_v30 = vld [vmem:[#allocation10 + $0xe0] sm:$0xff]  ;;  %v2409_v33 = vld [vmem:[#allocation10 + $0xc8] sm:$0xff] }
  0xc8   : > { %1126 = vmatpush.bf16.msra.mxu2 %v2378_v19  ;;  %v2408_v35 = vld [vmem:[#allocation10 + $0xc0] sm:$0xff]  ;;  %v2401_v37 = vld [vmem:[#allocation13 + $0x88] sm:$0xff] }
  0xc9   : > { %1028 = vmatpush.bf16.msra.mxu1 %v2370_v23  ;;  %v2406_v23 = vld [vmem:[#allocation13 + $0xb0] sm:$0xff] }
  0xca   : > { %936 = vmatpush.bf16.msra.mxu0 %v2361_v7 }
  0xcb   : > { %1212 = vmatpush.bf16.msra.mxu3 %v2387_v41 }
  0xcc   : > { %1127 = vmatpush.bf16.msra.mxu2 %v2377_v24  ;;  %v2415_v24 = vld [vmem:[#allocation10 + $0xf8] sm:$0xff] }
  0xcd   : > { %1029 = vmatpush.bf16.msra.mxu1 %v2369_v25  ;;  %v2405_v25 = vld [vmem:[#allocation13 + $0xa8] sm:$0xff] }
  0xce   : > { %937 = vmatpush.bf16.msra.mxu0 %v2360_v10 }
  0xcf   : > { %1213 = vmatpush.bf16.msra.mxu3 %v2386_v52 }
  0xd0   : > { %1128 = vmatpush.bf16.msra.mxu2 %v2376_v26  ;;  %v2414_v26 = vld [vmem:[#allocation10 + $0xf0] sm:$0xff] }
  0xd1   : > { %1030 = vmatpush.bf16.msra.mxu1 %v2368_v27  ;;  %v2404_v27 = vld [vmem:[#allocation13 + $0xa0] sm:$0xff] }
  0xd2   : > { %938 = vmatpush.bf16.msra.mxu0 %v2359_v13  ;;  %v1257_v13 = vld [vmem:[%s719_s12] sm:$0xff] }
  0xd3   : > { %1214 = vmatpush.bf16.msra.mxu3 %v2385_v54  ;;  %v1258_v14 = vpack.c.bf16 %v1257_v13, %v1257_v13  ;;  %v2606_v13 = vld [vmem:[#allocation14 + $0x2] ss:$0 sm:$0xff] }
  0xd4   : > { %1129 = vmatpush.bf16.msra.mxu2 %v2375_v28  ;;  %v2413_v28 = vld [vmem:[#allocation10 + $0xe8] sm:$0xff] }
  0xd5   : > { %939 = vmatmul.bf16.vlgmr.msra.gmra.mxu0 %v861_v18  ;;  %1031 = vmatpush.bf16.msra.mxu1 %v2367_v31  ;;  %v2411_v31 = vld [vmem:[#allocation10 + $0xd8] sm:$0xff] }
  0xd6   : > { %1329 = vmatpush.bf16.msrb.mxu0 %v2399_v0  ;;  %v2420_v0 = vld [vmem:[#allocation13 + $0xe0] sm:$0xff] }
  0xd7   : > { %1130 = vmatmul.bf16.vlgmr.msra.gmra.mxu2 %v1051_v32  ;;  %1215 = vmatpush.bf16.msra.mxu3 %v2384_v57  ;;  %v2410_v32 = vld [vmem:[#allocation10 + $0xd0] sm:$0xff] }
  0xda   : > { %1330 = vmatpush.bf16.msrb.mxu0 %v2398_v1  ;;  %v2419_v1 = vld [vmem:[#allocation13 + $0xd8] sm:$0xff] }
  0xdb   : > { %1216 = vmatpush.bf16.msra.mxu3 %v2383_v59  ;;  %v2423_v59 = vld [vmem:[#allocation13 + $0xf8] sm:$0xff] }
  0xde   : > { %1331 = vmatpush.bf16.msrb.mxu0 %v2397_v2  ;;  %v2418_v2 = vld [vmem:[#allocation13 + $0xd0] sm:$0xff] }
  0xe2   : > { %1332 = vmatpush.bf16.msrb.mxu0 %v2396_v3  ;;  %v2417_v3 = vld [vmem:[#allocation13 + $0xc8] sm:$0xff] }
  0xe5   : > { %944 = vmatmul.bf16.gmra.mxu0 %v862_v22  ;;  %v2407_v22 = vld [vmem:[#allocation13 + $0xb8] sm:$0xff] }
  0xe6   : > { %1333 = vmatpush.bf16.msrb.mxu0 %v2395_v6  ;;  %1414 = vmatpush.bf16.msrb.mxu1 %v2407_v22  ;;  %v1620_v22 = vld [vmem:[#allocation20] sm:$0xf] }
  0xea   : > { %1334 = vmatpush.bf16.msrb.mxu0 %v2394_v8  ;;  %1415 = vmatpush.bf16.msrb.mxu1 %v2406_v23  ;;  %v2416_v8 = vld [vmem:[#allocation13 + $0xc0] sm:$0xff] }
  0xee   : > { %1335 = vmatpush.bf16.msrb.mxu0 %v2393_v9  ;;  %1416 = vmatpush.bf16.msrb.mxu1 %v2405_v25 }
  0xf2   : > { %1336 = vmatpush.bf16.msrb.mxu0 %v2392_v12  ;;  %1417 = vmatpush.bf16.msrb.mxu1 %v2404_v27 }
  0xf5   : > { %1337 = vmatmul.bf16.vlgmr.msrb.gmra.mxu0 %v1258_v14 }
  0xf6   : > { %1418 = vmatpush.bf16.msrb.mxu1 %v2403_v29 }
 0x152   : > { %v940_v34 = vpop.f32.mrf.mxu0 }
 0x153   : > { %v941_v38 = vadd.f32 %v2601_v36, %v940_v34  ;;  %v2402_v34 = vld [vmem:[#allocation13 + $0x90] sm:$0xff] }
 0x154   : > { %1419 = vmatpush.bf16.msrb.mxu1 %v2402_v34 }
 0x155   : > { %v950_v42 = vmax.f32 %v941_v38, 0.0  ;;  %v1450_v38 = vld [vmem:[%s729_s28] sm:$0xff]  ;;  %s1673_s28 = scalar_lea.hbm %s3792_s16, %s2424_s29 }
 0x158   : > { %1420 = vmatpush.bf16.msrb.mxu1 %v2401_v37 }
 0x15a   : > { %v942_v39 = vpop.f32.mrf.mxu0  ;;  %v1131_v53 = vpop.f32.mrf.mxu2 }
 0x15b   : > { %v943_v40 = vadd.f32 %v2601_v36, %v942_v39  ;;  %v1132_v56 = vadd.f32 %v2603_v55, %v1131_v53  ;;  %v1451_v39 = vpack.c.bf16 %v1450_v38, %v1450_v38 }
 0x15d   : > { %v951_v43 = vmax.f32 %v943_v40, 0.0  ;;  %v1136_v60 = vmax.f32 %v1132_v56, 0.0  ;;  %v1251_v56 = vld [vmem:[#allocation17 + $0x8] sm:$0xff] }
 0x15f   : > { %v954_v44 = vpack.c.bf16 %v951_v43, %v950_v42  ;;  %v2400_v42 = vld [vmem:[#allocation13 + $0x80] sm:$0xff] }
 0x160   : > { %1421 = vmatpush.bf16.msrb.mxu1 %v2400_v42 }
 0x161   : > { %1032 = vmatmul.bf16.vlgmr.msra.gmra.mxu1 %v954_v44 }
 0x162   : > { %v945_v45 = vpop.f32.mrf.mxu0  ;;  %v1133_v58 = vpop.f32.mrf.mxu2 }
 0x163   : > { %v946_v46 = vadd.f32 %v2601_v36, %v945_v45  ;;  %v1134_v61 = vadd.f32 %v2603_v55, %v1133_v58 }
 0x165   : > { %v952_v49 = vmax.f32 %v946_v46, 0.0  ;;  %v1137_v62 = vmax.f32 %v1134_v61, 0.0  ;;  %v1427_v61 = vld [vmem:[#allocation19] sm:$0xf] }
 0x167   : > { %v1138_v63 = vpack.c.bf16 %v1137_v62, %v1136_v60  ;;  %v2422_v62 = vld [vmem:[#allocation13 + $0xf0] sm:$0xff] }
 0x169   : > { %1217 = vmatmul.bf16.vlgmr.msra.gmra.mxu3 %v1138_v63  ;;  %v2421_v63 = vld [vmem:[#allocation13 + $0xe8] sm:$0xff] }
 0x16a   : > { %v947_v47 = vpop.f32.mrf.mxu0 }
 0x16b   : > { %v948_v48 = vadd.f32 %v2601_v36, %v947_v47  ;;  %v2605_v36 = vld [vmem:[#allocation11 + $0x2] ss:$0 sm:$0xff]  ;;  %v2604_v47 = vld [vmem:[#allocation14 + $0x1] ss:$0 sm:$0xff] }
 0x16d   : > { %v953_v50 = vmax.f32 %v948_v48, 0.0 }
 0x16f   : > { %v955_v51 = vpack.c.bf16 %v953_v50, %v952_v49  ;;  %v1250_v50 = vld [vmem:[#allocation17] sm:$0xff] }
 0x171   : > { %1037 = vmatmul.bf16.gmra.mxu1 %v955_v51 }
 0x172   : > { %v1338_v40 = vpop.f32.mrf.mxu0 }
 0x173   : > { %v1339_v41 = vadd.f32 %v2605_v36, %v1338_v40 }
 0x175   : > { %v1342_v43 = vmax.f32 %v1339_v41, 0.0 }
 0x177   : > { %v1343_v44 = vpack.c.bf16 %v1342_v43, %v1342_v43 }
 0x17a   : > { %v1340_v45 = vpop.f32.mrf.mxu0 }
 0x181   : > { %1422 = vmatmul.bf16.vlgmr.msrb.gmra.mxu1 %v1343_v44 }
 0x1de   : > { %v1033_v5 = vpop.f32.mrf.mxu1 }
 0x1df   : > { %v1034_v7 = vadd.f32 %v2602_v4, %v1033_v5 }
 0x1e1   : > { %1043 = vst [vmem:[%s3580_s5] sm:$0xff] %v1034_v7 }
 0x1e6   : > { %v1035_v10 = vpop.f32.mrf.mxu1 }
 0x1e7   : > { %v1036_v11 = vadd.f32 %v2602_v4, %v1035_v10 }
 0x1e9   : > { %1044 = vst [vmem:[%s3580_s5 + $0x8] sm:$0xff] %v1036_v11  ;;  %v1047_v20 = vpack.c.bf16 %v1036_v11, %v1034_v7 }
 0x1ec   : > { %v1218_v46 = vpop.f32.mrf.mxu3 }
 0x1ed   : > { %v1219_v48 = vadd.f32 %v2604_v47, %v1218_v46 }
 0x1ee   : > { %v1038_v15 = vpop.f32.mrf.mxu1 }
 0x1ef   : > { %v1039_v16 = vadd.f32 %v2602_v4, %v1038_v15 }
 0x1f1   : > { %1045 = vst [vmem:[%s3580_s5 + $0x10] sm:$0xff] %v1039_v16 }
 0x1f4   : > { %v1220_v53 = vpop.f32.mrf.mxu3 }
 0x1f5   : > { %v1221_v54 = vadd.f32 %v2604_v47, %v1220_v53 }
 0x1f6   : > { %v1040_v17 = vpop.f32.mrf.mxu1 }
 0x1f7   : > { %v1041_v18 = vadd.f32 %v2602_v4, %v1040_v17  ;;  %v2607_v4 = vld [vmem:[#allocation11 + $0x3] ss:$0 sm:$0xff] }
 0x1f9   : > { %1046 = vst [vmem:[%s3580_s5 + $0x18] sm:$0xff] %v1041_v18  ;;  %v1048_v19 = vpack.c.bf16 %v1041_v18, %v1039_v16  ;;  %v1446_v16 = vld [vmem:[%s3789_s22] sm:$0xff]  ;;  %s1652_s5 = scalar_lea.sflag [#allocation25], %s3530_s18 }
 0x1fb   : > { %1240 = vmatpush.bf16.msrb.mxu2 %v1048_v19 }
 0x1fe   : > { %v1423_v5 = vpop.f32.mrf.mxu1 }
 0x1ff   : > { %1241 = vmatpush.bf16.msrb.mxu2 %v1047_v20  ;;  %v1424_v14 = vadd.f32 %v2606_v13, %v1423_v5 }
 0x202   : > { %2214 = vmatmul.msk.bf16.vlgmr.msrb.gmra.mxu2 %vm1230_vm0, %v2391_v21 }
 0x203   : > { %1522 = vmatpush.bf16.msra.mxu2 %v2415_v24 }
 0x206   : > { %v1425_v11 = vpop.f32.mrf.mxu1 }
 0x207   : > { %1523 = vmatpush.bf16.msra.mxu2 %v2414_v26 }
 0x20b   : > { %1524 = vmatpush.bf16.msra.mxu2 %v2413_v28 }
 0x20f   : > { %1525 = vmatpush.bf16.msra.mxu2 %v2412_v30 }
 0x213   : > { %1526 = vmatpush.bf16.msra.mxu2 %v2411_v31 }
 0x217   : > { %1527 = vmatpush.bf16.msra.mxu2 %v2410_v32 }
 0x21b   : > { %1528 = vmatpush.bf16.msra.mxu2 %v2409_v33 }
 0x21f   : > { %1529 = vmatpush.bf16.msra.mxu2 %v2408_v35 }
 0x222   : > { %1530 = vmatmul.bf16.vlgmr.msra.gmra.mxu2 %v1451_v39 }
 0x285   : > { %v1243_v49 = vpop.f32.mrf.mxu2 }
 0x286   : > { %v1248_v51 = vadd.f32 %v1243_v49, %v1219_v48 }
 0x288   : > { %v1252_v52 = vadd.f32 %v1250_v50, %v1248_v51 }
 0x28a   : > { %1254 = vst [vmem:[%s3592_s8] sm:$0xff] %v1252_v52 }
 0x28d   : > { %v1245_v55 = vpop.f32.mrf.mxu2 }
 0x28e   : > { %v1249_v57 = vadd.f32 %v1245_v55, %v1221_v54 }
 0x290   : > { %v1253_v58 = vadd.f32 %v1251_v56, %v1249_v57 }
 0x292   : > { %1255 = vst [vmem:[%s3592_s8 + $0x8] sm:$0xff] %v1253_v58  ;;  %v1256_v60 = vpack.c.bf16 %v1253_v58, %v1252_v52  ;;  %s3013_s8 = sshra.s32 %s1694_s4, 4  ;;  %s3014_s8 = int_to_ptr.hbm [resolvable:$true] %s3013_s8 }
 0x293   : > { %s3015_s7 = scalar_lea.hbm %s3014_s8, 16  ;;  %p3020_p8 = scmp.lt.s32.totalorder %s3014_s8, %s3791_s1 }
 0x294   : > { %1439 = vmatpush.bf16.msrb.mxu3 %v1256_v60  ;;  %p3016_p10 = scmp.ne.s32.totalorder %s3014_s8, %s3015_s7  ;;  %p3021_p9 = scmp.lt.s32.totalorder %s3019_s15, %s3015_s7 }
 0x296   : > { %p3017_p11 = pnand %p3016_p10, %p3386_p0  ;;  %p3022_p12 = por %p3021_p9, %p3020_p8 }
 0x297   : > { %2279 = vmatmul.msk.bf16.vlgmr.msrb.gmra.mxu3 %vm1428_vm1, %v1427_v61 }
 0x298   : > { %1607 = vmatpush.bf16.msra.mxu3 %v2423_v59  ;;  %p3018_p3 = pneg %p3017_p11 }
 0x29a   : > { %p3023_p2 = pnand %p3022_p12, %p3018_p3 }
 0x29c   : > { %1608 = vmatpush.bf16.msra.mxu3 %v2422_v62 }
 0x2a0   : > { %1609 = vmatpush.bf16.msra.mxu3 %v2421_v63 }
 0x2a4   : > { %1610 = vmatpush.bf16.msra.mxu3 %v2420_v0 }
 0x2a5   : > { %v1531_v6 = vpop.f32.mrf.mxu2 }
 0x2a6   : > { %v1532_v7 = vadd.f32 %v2607_v4, %v1531_v6 }
 0x2a8   : > { %1611 = vmatpush.bf16.msra.mxu3 %v2419_v1  ;;  %v1535_v9 = vmax.f32 %v1532_v7, 0.0 }
 0x2aa   : > { %v1536_v10 = vpack.c.bf16 %v1535_v9, %v1535_v9 }
 0x2ac   : > { %1612 = vmatpush.bf16.msra.mxu3 %v2418_v2 }
 0x2ad   : > { %v1533_v12 = vpop.f32.mrf.mxu2 }
 0x2b0   : > { %1613 = vmatpush.bf16.msra.mxu3 %v2417_v3 }
 0x2b4   : > { %1614 = vmatpush.bf16.msra.mxu3 %v2416_v8 }
 0x2b7   : > { %1615 = vmatmul.bf16.vlgmr.msra.gmra.mxu3 %v1536_v10 }
 0x31a   : > { %v1441_v15 = vpop.f32.mrf.mxu3 }
 0x31b   : > { %v1445_v17 = vadd.f32 %v1441_v15, %v1424_v14 }
 0x31d   : > { %v1447_v18 = vadd.f32 %v1446_v16, %v1445_v17 }
 0x31f   : > { %1448 = vst [vmem:[%s848_s13] sm:$0xff] %v1447_v18  ;;  %v1449_v19 = vpack.c.bf16 %v1447_v18, %v1447_v18 }
 0x321   : > { %v1627_v20 = vsel %vm1625_vm2, %v1449_v19, 0 }
 0x322   : > { %v1443_v21 = vpop.f32.mrf.mxu3  ;;  %1636 = vmatpush.bf16.msra.mxu0 %v1627_v20 }
 0x325   : > { %2344 = vmatmul.msk.bf16.vlgmr.msra.gmra.mxu0 %vm1621_vm3, %v1620_v22 }
 0x326   : > { %3026 = shalt.err (!%p3023_p2)
}
 0x327   : > { %s3202_s26 = smov 128   ;;  %s3203_s14 = smov 8  }
 0x328   : > { %2471 = dma.vmem_to_hbm [thread:$0]  (%p3386_p0), %s1692_s9, 256, %s1694_s4, %s1652_s5, %s3202_s26, %s3202_s26, %s3203_s14  }
 0x329   : > { %s1676_s29 = sshll.u32 %s1673_s28, 4  ;;  %s2353_s0 = sshll.u32 %s3318_s30, 3  ;;  %s1677_s29 = int_to_ptr.hbm [resolvable:$true] %s1676_s29 }
 0x32a   : > { %s1647_s12 = scalar_lea.sflag [#allocation4], %s3517_s19  ;;  %s3041_s23 = sshra.s32 %s1677_s29, 4  ;;  %s3042_s23 = int_to_ptr.hbm [resolvable:$true] %s3041_s23 }
 0x32b   : > { %s3043_s8 = scalar_lea.hbm %s3042_s23, 32  ;;  %s3047_s15 = scalar_lea.hbm %s3792_s16, 64 }
 0x32c   : > { %p3044_p4 = scmp.ne.s32.totalorder %s3042_s23, %s3043_s8  ;;  %p3048_p7 = scmp.lt.s32.totalorder %s3042_s23, %s3792_s16 }
 0x32d   : > { %p3049_p6 = scmp.lt.s32.totalorder %s3047_s15, %s3043_s8 }
 0x32e   : > { %p3045_p13 = pnand %p3044_p4, %p3386_p0 }
 0x32f   : > { %p3050_p10 = por %p3049_p6, %p3048_p7 }
 0x330   : > { %p3046_p1 = pneg %p3045_p13 }
 0x332   : > { %p3051_p11 = pnand %p3050_p10, %p3046_p1 }
 0x334   : > { %3054 = shalt.err (!%p3051_p11)
}
 0x335   : > { %2470 = dma.vmem_to_hbm [thread:$0]  (%p3386_p0), %s3604_s21, 512, %s1677_s29, %s1647_s12, %s3202_s26, %s3202_s26, %s3203_s14  }
 0x336   : > { %s3793_s28 = sld [smem:[#allocation59_spill]]  ;;  %s1708_s22 = sshll.u32 %s848_s13, 4  ;;  %s1709_s22 = int_to_ptr.vmem [resolvable:$true] %s1708_s22 }
 0x33c   : > { %s1706_s7 = scalar_lea.hbm %s3793_s28, %s2353_s0  ;;  %s3075_s21 = scalar_lea.hbm %s3793_s28, 16 }
 0x33d   : > { %s1710_s23 = sshll.u32 %s1706_s7, 4  ;;  %s1711_s23 = int_to_ptr.hbm [resolvable:$true] %s1710_s23 }
 0x33e   : > { %s3069_s8 = sshra.s32 %s1711_s23, 4  ;;  %s3070_s8 = int_to_ptr.hbm [resolvable:$true] %s3069_s8 }
 0x33f   : > { %s3071_s15 = scalar_lea.hbm %s3070_s8, 8  ;;  %p3076_p12 = scmp.lt.s32.totalorder %s3070_s8, %s3793_s28 }
 0x340   : > { %p3072_p3 = scmp.ne.s32.totalorder %s3070_s8, %s3071_s15  ;;  %p3077_p2 = scmp.lt.s32.totalorder %s3075_s21, %s3071_s15 }
 0x342   : > { %p3073_p8 = pnand %p3072_p3, %p3386_p0  ;;  %p3078_p4 = por %p3077_p2, %p3076_p12 }
 0x344   : > { %p3074_p9 = pneg %p3073_p8 }
 0x346   : > { %p3079_p13 = pnand %p3078_p4, %p3074_p9 }
 0x348   : > { %3082 = shalt.err (!%p3079_p13)
}
 0x349   : > { %2472 = dma.vmem_to_hbm [thread:$0]  (%p3386_p0), %s1709_s22, 128, %s1711_s23, %s1652_s5   ;;  %v1616_v23 = vpop.f32.mrf.mxu3  ;;  %v2608_v25 = vld [vmem:[#allocation14 + $0x3] ss:$0 sm:$0xff]  ;;  %v1643_v28 = vld [vmem:[#allocation22] sm:$0xff] }
 0x34a   : > { %v1617_v26 = vadd.f32 %v2608_v25, %v1616_v23  ;;  %s3794_s12 = sld [smem:[#allocation60_spill]]  ;;  %s855_s4 = scalar_lea.vmem [#allocation27], %s3543_s17 }
 0x34b   : > { %s1722_s7 = sshll.u32 %s855_s4, 4  ;;  %s1662_s18 = scalar_lea.sflag [#allocation28], %s3517_s19  ;;  %s1723_s7 = int_to_ptr.vmem [resolvable:$true] %s1722_s7 }
 0x350   : > { %s1720_s9 = scalar_lea.hbm %s3794_s12, %s2353_s0  ;;  %s3103_s23 = scalar_lea.hbm %s3794_s12, 16 }
 0x351   : > { %v1618_v24 = vpop.f32.mrf.mxu3  ;;  %s1724_s8 = sshll.u32 %s1720_s9, 4  ;;  %s1725_s8 = int_to_ptr.hbm [resolvable:$true] %s1724_s8 }
 0x352   : > { %s3097_s5 = sshra.s32 %s1725_s8, 4  ;;  %s3098_s5 = int_to_ptr.hbm [resolvable:$true] %s3097_s5 }
 0x353   : > { %s3099_s22 = scalar_lea.hbm %s3098_s5, 8  ;;  %p3104_p10 = scmp.lt.s32.totalorder %s3098_s5, %s3794_s12 }
 0x354   : > { %p3100_p1 = scmp.ne.s32.totalorder %s3098_s5, %s3099_s22  ;;  %p3105_p11 = scmp.lt.s32.totalorder %s3103_s23, %s3099_s22 }
 0x356   : > { %p3101_p7 = pnand %p3100_p1, %p3386_p0  ;;  %p3106_p3 = por %p3105_p11, %p3104_p10 }
 0x358   : > { %p3102_p6 = pneg %p3101_p7 }
 0x35a   : > { %p3107_p8 = pnand %p3106_p3, %p3102_p6 }
 0x3a2   : > { %v1638_v27 = vpop.f32.mrf.mxu0 }
 0x3a3   : > { %v1642_v29 = vadd.f32 %v1638_v27, %v1617_v26 }
 0x3a5   : > { %v1644_v30 = vadd.f32 %v1643_v28, %v1642_v29 }
 0x3a7   : > { %1645 = vst [vmem:[%s855_s4] sm:$0xff] %v1644_v30 }
 0x3a8   : > { %3110 = shalt.err (!%p3107_p8)
}
 0x3a9   : > { %2473 = dma.vmem_to_hbm [thread:$0]  (%p3386_p0), %s1723_s7, 128, %s1725_s8, %s1662_s18  }
 0x3aa   : > { %v1640_v31 = vpop.f32.mrf.mxu0 }
 0x3ab PF: > { %s3795_s19 = sld [smem:[#allocation40_spill]]  ;;  %p3797_p9 = scmp.ge.s32.totalorder %s3185_s27, 2 }
 0x3ad   : > { %p2520_p12 = pnand %p3797_p9, %p3396_p5 }
 0x3af   : > { %p2521_p2 = pneg %p2520_p12 }
 0x3b1   : > { %s1736_s10 = sand.u32 1, %s3795_s19  }
 0x3b2   : > { %s1737_s21 = scalar_lea.sflag [#allocation4], %s1736_s10 }
 0x3b3   : > { %3160 = dma.done.wait (%p2521_p2), %s1737_s21, 512  }
 0x3b4   : > { %3162 = vsyncadd (%p2521_p2), %s1737_s21, 4294966784  ;;  %s3798_s26 = sadd.s32 4294967294, %s3185_s27  }
 0x3b5   : > { %s1746_s14 = sand.u32 1, %s3798_s26  }
 0x3b6   : > { %s1747_s13 = scalar_lea.sflag [#allocation25], %s1746_s14 }
 0x3b7   : > { %3164 = dma.done.wait (%p2521_p2), %s1747_s13, 384  }
 0x3b8   : > { %3166 = vsyncadd (%p2521_p2), %s1747_s13, 4294966912  ;;  %s1767_s11 = scalar_lea.sflag [#allocation28], %s1736_s10 }
 0x3b9   : > { %3168 = dma.done.wait (%p2521_p2), %s1767_s11, 128  }
 0x3ba   : > { %3170 = vsyncadd (%p2521_p2), %s1767_s11, 4294967168  ;;  %s3799_s27 = sld [smem:[#allocation42_spill]]  ;;  %s3802_s24 = smov %s3177_s25 }
 0x3bb   : > { %s3800_s29 = sld [smem:[#allocation41_spill]] }
 0x3bc   : > { %s3801_s26 = sld [smem:[#allocation43_spill]] }
 0x3c0   : > { %p47_p0 = scmp.ge.s32.totalorder %s3799_s27, 4  }
 0x3c1   : > { %s3803_s25 = smov %s3800_s29 }
 0x3c2   :  { %49 = sbr.rel (!%p47_p0) target bundleno = 34 (0x22), region = 255 }
 0x3c7   :  { %1773 = vsyncpa [#allocation3], 1 }
 0x3c8   :  { %1775 = vsyncpa [#allocation3 + $0x1], 1 }
 0x3c9   :  { %1776 = vsyncpa [#allocation6], 1 }
 0x3ca   :  { %1778 = vsyncpa [#allocation6 + $0x1], 1 }
 0x3cb   :  { %1779 = vsyncpa [#allocation9], 1 }
 0x3cc   :  { %1781 = vsyncpa [#allocation9 + $0x1], 1 }
 0x3cd   :  { %1782 = vsyncpa [#allocation12], 1 }
 0x3ce   :  { %1783 = vsyncpa [#allocation15], 1 }
 0x3cf   :  { %1784 = vsyncpa [#allocation18], 1 }
 0x3d0   :  { %1785 = vsyncpa [#allocation21], 1 }
 0x3d1   :  { %1786 = vsyncpa [#allocation4], 1 }
 0x3d2   :  { %1788 = vsyncpa [#allocation4 + $0x1], 1 }
 0x3d3   :  { %1789 = vsyncpa [#allocation25], 1 }
 0x3d4   :  { %1791 = vsyncpa [#allocation25 + $0x1], 1 }
 0x3d5   :  { %1792 = vsyncpa [#allocation28], 1 }
 0x3d6   :  { %1794 = vsyncpa [#allocation28 + $0x1], 1 }

</bundles_post_ra>
